<compile_context>
chip_gen: v5e
topology: v5e:2x2
jax: 0.10.0
libtpu: 0.0.40
codegen_flags: <defaults>
</compile_context>

<pallas_src>
import math
import numpy as np
import jax
import jax.numpy as jnp
from jax.experimental import pallas as pl
from jax.experimental.pallas import tpu as pltpu

# ---------------- model hyper-parameters ------------------------------------
B = 16           # batch rows per grid step (tile)
TEXT = 64        # args.text_size
EMB = 128        # embedding_dim
HID = 64         # encodeMLP hidden size
F = 32           # feature_out (== fusion embed_dim)
SEQ = 3          # number of stacked modality features
HEADS = 4        # nn.MultiheadAttention num_heads
HD = F // HEADS  # head dim = 8
LEAKY = 0.01     # nn.LeakyReLU default slope
EPS = 1e-5       # LayerNorm / BatchNorm eps
OUT_W = 4 * F    # 128-lane output slab
DATA_W = 256     # packed input slab width: text|gcn|dct|unc|pad

# lane offsets inside the packed data slab
_T0, _G0, _D0, _U0 = 0, TEXT, TEXT + F, TEXT + 2 * F


# ---------------- parameter slab layout (sublane-stacked, 128 lanes) ---------
def _build_layout():
    off = 0
    lay = {}

    def put(name, rows, cols):
        nonlocal off
        lay[name] = (off, rows, cols)
        off = -(-(off + rows) // 8) * 8   # keep every region 8-sublane aligned

    put("W1", TEXT, EMB)                  # bn1-folded mlp.fc1
    put("FOLD", EMB, HID)                 # mlp.fc2 @ text_fea.fc1
    put("TF2", HID, F)                    # text_fea.fc2
    put("QKV", F, 3 * F)                  # in_proj (q-scale folded)
    put("OP", F, F)                       # out_proj weight (bias folded into M1B)
    put("SEG", SEQ * F, SEQ * HEADS)      # block-diag head-segment sum (96,12)
    put("EXP", SEQ * HEADS, SEQ * F)      # block-diag head expand (12,96)
    put("M1", SEQ * F + SEQ * SEQ * HEADS, F)   # mlp1 packed (132,32)
    put("C1", F, F)                       # classifier Linear(32,32)
    put("C2", F, F)                       # classifier Linear(32,2) zero-padded
    put("B1F", 1, EMB)
    put("FOLDB", 1, HID)
    put("TF2B", 1, F)
    put("LNG", 1, F)
    put("LNB", 1, F)
    put("N1G", 1, F)
    put("N1B", 1, F)
    put("QKVB", 1, 3 * F)
    put("M1B", 1, F)
    put("C1B", 1, F)
    put("C2B", 1, F)
    return lay, off


LAYOUT, W_ROWS = _build_layout()          # W_ROWS == 720


def _w(ref, name):
    r0, rows, cols = LAYOUT[name]
    return ref[r0:r0 + rows, 0:cols]


def _leaky(x):
    return jnp.where(x > 0, x, LEAKY * x)


def _layernorm(x, g, b):
    mu = jnp.mean(x, axis=-1, keepdims=True)
    var = jnp.mean(x * x, axis=-1, keepdims=True) - mu * mu
    return (x - mu) * jax.lax.rsqrt(var + EPS) * g + b


# ---------------- kernel ------------------------------------------------------
def fakenews_kernel(data_ref, w_ref, out_ref):
    dot = lambda a, b: jnp.dot(a, b, preferred_element_type=jnp.float32)

    data = data_ref[...]                                  # (B, 256)
    text = data[:, _T0:_T0 + TEXT]
    gcn = data[:, _G0:_G0 + F]
    dct = data[:, _D0:_D0 + F]
    unc = data[:, _U0:_U0 + 1]                            # (B, 1)

    # --- text path: bn1+mlp.fc1 (folded) -> LeakyReLU -> (mlp.fc2@tf.fc1) ----
    h = _leaky(dot(text, _w(w_ref, "W1")) + _w(w_ref, "B1F"))       # (B, EMB)
    bp = dot(h, _w(w_ref, "FOLD")) + _w(w_ref, "FOLDB")             # (B, HID)
    bert = dot(_leaky(bp), _w(w_ref, "TF2")) + _w(w_ref, "TF2B")    # (B, F)

    # --- stack modalities along sublanes, scale by (1 - uncertain) -----------
    su = 1.0 - unc
    xs = jnp.concatenate([gcn * su, dct * su, bert * su], axis=0)   # (3B, F)

    # --- self.ln then fusion.norm1 (norm_first path) --------------------------
    xs = _layernorm(xs, _w(w_ref, "LNG"), _w(w_ref, "LNB"))
    tn = _layernorm(xs, _w(w_ref, "N1G"), _w(w_ref, "N1B"))

    # --- multihead attention (fused block-diagonal formulation) ---------------
    qkv = dot(tn, _w(w_ref, "QKV")) + _w(w_ref, "QKVB")             # (3B, 3F)
    q = qkv[:, 0:F]                      # q-scale already folded into weights
    k = qkv[:, F:2 * F]
    v = qkv[:, 2 * F:3 * F]

    # lane-concat the 3 key/value sublane blocks once, then one sublane tile
    kcat = jnp.concatenate([k[0:B], k[B:2 * B], k[2 * B:3 * B]], axis=-1)  # (B, 3F)
    vcat = jnp.concatenate([v[0:B], v[B:2 * B], v[2 * B:3 * B]], axis=-1)
    kt = jnp.concatenate([kcat, kcat, kcat], axis=0)                       # (3B, 3F)
    vt = jnp.concatenate([vcat, vcat, vcat], axis=0)
    qr = jnp.concatenate([q, q, q], axis=-1)                               # (3B, 3F)

    # scores[r, kp*HEADS + h] via one matmul against block-diag segment matrix
    scores = dot(qr * kt, _w(w_ref, "SEG"))                                # (3B, 12)

    s0 = scores[:, 0:HEADS]
    s1 = scores[:, HEADS:2 * HEADS]
    s2 = scores[:, 2 * HEADS:3 * HEADS]
    m = jnp.maximum(jnp.maximum(s0, s1), s2)                               # (3B, 4)
    e = jnp.exp(scores - jnp.concatenate([m, m, m], axis=-1))              # (3B, 12)
    den = e[:, 0:HEADS] + e[:, HEADS:2 * HEADS] + e[:, 2 * HEADS:3 * HEADS]
    p = e / jnp.concatenate([den, den, den], axis=-1)                      # softmax over keys

    # context: expand head probs to lanes via block-diag matmul, weight values
    pr = dot(p, _w(w_ref, "EXP"))                                          # (3B, 3F)
    ctxw = pr * vt
    ctx = ctxw[:, 0:F] + ctxw[:, F:2 * F] + ctxw[:, 2 * F:3 * F]           # (3B, F)
    y = dot(ctx, _w(w_ref, "OP"))                 # out_proj (bias folded into M1B)

    # --- mlp1( cat([y.reshape(B,96), FixedPooling(attn).reshape(B,36)]) ) -----
    # FixedPooling(6) zero-pads 3x3 -> 6x6 (maxpool(1,1) identity); zero columns
    # contribute nothing; the 1/HEADS head average and the column selection are
    # folded into the packed M1 weight on the host.
    ycat = jnp.concatenate([y[0:B], y[B:2 * B], y[2 * B:3 * B]], axis=-1)   # (B, 3F)
    pcat = jnp.concatenate([p[0:B], p[B:2 * B], p[2 * B:3 * B]], axis=-1)   # (B, 36)
    yemb = dot(jnp.concatenate([ycat, pcat], axis=-1), _w(w_ref, "M1")) \
        + _w(w_ref, "M1B")                                                 # (B, F)

    # --- mlp_classifier: LeakyReLU -> Linear -> LeakyReLU -> Linear(->2) ------
    z = _leaky(yemb)
    z = _leaky(dot(z, _w(w_ref, "C1")) + _w(w_ref, "C1B"))
    yout = dot(z, _w(w_ref, "C2")) + _w(w_ref, "C2B")     # (B, F): logits in lanes 0:2

    out_ref[...] = jnp.concatenate(
        [yemb, bert, yout, jnp.zeros((B, F), jnp.float32)], axis=-1)        # (B, 128)


# ---------------- host-side parameter construction + packing -----------------
def init_params(key):
    ks = jax.random.split(key, 16)

    def W(k, i, o, s=0.05):
        return jax.random.normal(k, (i, o), jnp.float32) * s

    def bvec(k, n, s=0.02):
        return jax.random.normal(k, (n,), jnp.float32) * s

    # logical (PyTorch-equivalent) parameters
    bn_g = 1.0 + bvec(ks[0], TEXT)
    bn_b = bvec(ks[1], TEXT)
    run_mean = jnp.zeros((TEXT,), jnp.float32)    # BatchNorm1d running stats (eval)
    run_var = jnp.ones((TEXT,), jnp.float32)
    mlp_w1, mlp_b1 = W(ks[2], TEXT, EMB), bvec(ks[3], EMB)
    mlp_w2, mlp_b2 = W(ks[4], EMB, EMB), bvec(ks[5], EMB)
    tf_w1, tf_b1 = W(ks[6], EMB, HID), bvec(ks[7], HID)
    tf_w2, tf_b2 = W(ks[8], HID, F), bvec(ks[9], F)
    ln_g, ln_b = jnp.ones((F,), jnp.float32), jnp.zeros((F,), jnp.float32)
    n1_g, n1_b = jnp.ones((F,), jnp.float32), jnp.zeros((F,), jnp.float32)
    qkv_w, qkv_b = W(ks[10], F, 3 * F), bvec(ks[11], 3 * F)
    op_w, op_b = W(ks[12], F, F), bvec(ks[13], F)
    m1_w = jax.random.normal(ks[14], (F, 3 * F + 36), jnp.float32) * 0.05   # torch (out,in)
    m1_b = jnp.zeros((F,), jnp.float32)
    c_w1, c_b1 = W(ks[15], F, F), jnp.zeros((F,), jnp.float32)
    c_w2 = W(ks[0], F, 2)
    c_b2 = jnp.zeros((2,), jnp.float32)

    # --- host folds -----------------------------------------------------------
    bn_s = bn_g / jnp.sqrt(run_var + EPS)                      # bn1 scale
    bn_sh = bn_b - run_mean * bn_s                             # bn1 shift
    W1 = mlp_w1 * bn_s[:, None]
    B1F = bn_sh @ mlp_w1 + mlp_b1
    FOLD = mlp_w2 @ tf_w1                                      # (EMB, HID)
    FOLDB = mlp_b2 @ tf_w1 + tf_b1
    qscale = 1.0 / math.sqrt(HD)
    QKVW = qkv_w.at[:, 0:F].multiply(qscale)
    QKVB = qkv_b.at[0:F].multiply(qscale)

    # constant block-diagonal segment / expand matrices
    lane = np.arange(SEQ * F)
    kp_l, h_l = lane // F, (lane % F) // HD
    col = np.arange(SEQ * HEADS)
    kp_c, h_c = col // HEADS, col % HEADS
    SEG = ((kp_l[:, None] == kp_c[None, :]) &
           (h_l[:, None] == h_c[None, :])).astype(np.float32)  # (96, 12)
    EXP = SEG.T                                                # (12, 96)

    # mlp1: y part + attention part (6x6 padded, head-averaged) in kernel order
    Wy = jnp.transpose(m1_w[:, 0:3 * F])                       # (96, F)
    Wattn = m1_w[:, 3 * F:]                                    # (F, 36), col = i*6+j
    sel = np.array([qp * 6 + kp for qp in range(SEQ)
                    for kp in range(SEQ) for _ in range(HEADS)])
    Wp = jnp.transpose(Wattn[:, sel]) / HEADS                  # (36, F)
    M1 = jnp.concatenate([Wy, Wp], axis=0)                     # (132, F)
    M1B = m1_b + jnp.concatenate([op_b, op_b, op_b]) @ Wy      # out_proj bias folded in

    C2 = jnp.concatenate([c_w2, jnp.zeros((F, F - 2), jnp.float32)], axis=1)
    C2B = jnp.concatenate([c_b2, jnp.zeros((F - 2,), jnp.float32)])

    # --- pack everything into one (W_ROWS, 128) slab --------------------------
    slab = np.zeros((W_ROWS, 128), np.float32)

    def put(name, arr):
        r0, rows, cols = LAYOUT[name]
        slab[r0:r0 + rows, 0:cols] = np.asarray(arr, np.float32).reshape(rows, cols)

    put("W1", W1); put("FOLD", FOLD); put("TF2", tf_w2); put("QKV", QKVW)
    put("OP", op_w); put("SEG", SEG); put("EXP", EXP); put("M1", M1)
    put("C1", c_w1); put("C2", C2)
    put("B1F", B1F); put("FOLDB", FOLDB); put("TF2B", tf_b2)
    put("LNG", ln_g); put("LNB", ln_b); put("N1G", n1_g); put("N1B", n1_b)
    put("QKVB", QKVB); put("M1B", M1B); put("C1B", c_b1); put("C2B", C2B)
    return jnp.asarray(slab)


# ---------------- wrapper -----------------------------------------------------
def fake_news_forward(text, gcn_out, dct_out, uncertain, w_slab):
    bt = text.shape[0]
    nb = pl.cdiv(bt, B)
    bp = nb * B

    data = jnp.concatenate(
        [text, gcn_out, dct_out, uncertain,
         jnp.zeros((bt, DATA_W - (TEXT + 2 * F + 1)), jnp.float32)], axis=-1)
    if bp != bt:
        data = jnp.pad(data, ((0, bp - bt), (0, 0)))

    fn = pl.pallas_call(
        fakenews_kernel,
        out_shape=jax.ShapeDtypeStruct((bp, OUT_W), jnp.float32),
        grid_spec=pltpu.PrefetchScalarGridSpec(
            num_scalar_prefetch=0,
            grid=(nb,),
            in_specs=[
                pl.BlockSpec((B, DATA_W), lambda i: (i, 0)),        # batch tile
                pl.BlockSpec((W_ROWS, 128), lambda i: (0, 0)),      # resident weights
            ],
            out_specs=pl.BlockSpec((B, OUT_W), lambda i: (i, 0)),
        ),
        compiler_params=pltpu.CompilerParams(dimension_semantics=("parallel",)),
    )
    slab = fn(data, w_slab)

    y_embed = slab[:bt, 0:F]
    bert = slab[:bt, F:2 * F]
    y_out = slab[:bt, 2 * F:2 * F + 2]

    # TODO(synk): evn_single / loss come from the undefined fushion_decision module;
    # returned as zero placeholders.
    evn_single = jnp.zeros((bt, 2), jnp.float32)
    loss = jnp.zeros((), jnp.float32)
    return y_out, y_embed, evn_single, uncertain, loss, gcn_out, dct_out, bert


if __name__ == "__main__":
    key = jax.random.PRNGKey(0)
    k1, k2, k3, k4, k5 = jax.random.split(key, 5)
    text = jax.random.normal(k1, (B, TEXT), jnp.float32)
    gcn_out = jax.random.normal(k2, (B, F), jnp.float32)
    dct_out = jax.random.normal(k3, (B, F), jnp.float32)
    uncertain = jax.nn.sigmoid(jax.random.normal(k4, (B, 1), jnp.float32))
    w_slab = init_params(k5)

    outs = fake_news_forward(text, gcn_out, dct_out, uncertain, w_slab)
    jax.block_until_ready(outs)

    y_out, y_embed, bert = outs[0], outs[1], outs[7]
    assert y_out.shape == (B, 2) and y_embed.shape == (B, F) and bert.shape == (B, F)
    assert bool(jnp.all(jnp.isfinite(y_out)))
    assert bool(jnp.all(jnp.isfinite(y_embed)))
    assert bool(jnp.all(jnp.isfinite(bert)))
    print("KERNEL_OK")
</pallas_src>

<mosaic_0001>
module attributes {stable_mosaic.version = 11 : i64} {
  func.func @fakenews_kernel(%arg0: i32, %arg1: memref<16x256xf32, #tpu.memory_space<vmem>>, %arg2: memref<720x128xf32, #tpu.memory_space<vmem>>, %arg3: memref<16x128xf32, #tpu.memory_space<vmem>>) attributes {dimension_semantics = [#tpu.dimension_semantics<parallel>], iteration_bounds = array<i64: 1>, scalar_prefetch = 0 : i64, scratch_operands = 0 : i64, tpu.core_type = #tpu.core_type<tc>, window_params = [{transform_indices = @transform_0, window_bounds = array<i64: 16, 256>}, {pipeline_mode = #tpu.pipeline_mode<synchronous>, transform_indices = @transform_1, window_bounds = array<i64: 720, 128>}, {transform_indices = @transform_2, window_bounds = array<i64: 16, 128>}]} {
    %c0 = arith.constant 0 : index
    %c0_0 = arith.constant 0 : index
    %0 = vector.load %arg1[%c0, %c0_0] : memref<16x256xf32, #tpu.memory_space<vmem>>, vector<16x256xf32>
    %1 = vector.extract_strided_slice %0 {offsets = [0, 0], sizes = [16, 64], strides = [1, 1]} : vector<16x256xf32> to vector<16x64xf32>
    %2 = vector.extract_strided_slice %0 {offsets = [0, 64], sizes = [16, 32], strides = [1, 1]} : vector<16x256xf32> to vector<16x32xf32>
    %3 = vector.extract_strided_slice %0 {offsets = [0, 96], sizes = [16, 32], strides = [1, 1]} : vector<16x256xf32> to vector<16x32xf32>
    %4 = vector.extract_strided_slice %0 {offsets = [0, 128], sizes = [16, 1], strides = [1, 1]} : vector<16x256xf32> to vector<16x1xf32>
    %c0_1 = arith.constant 0 : index
    %c0_2 = arith.constant 0 : index
    %5 = vector.load %arg2[%c0_1, %c0_2] : memref<720x128xf32, #tpu.memory_space<vmem>>, vector<64x128xf32>
    %cst = arith.constant dense<0.000000e+00> : vector<16x128xf32>
    %6 = tpu.matmul %1, %5, %cst {dimension_numbers = #tpu.dot_dimension_numbers<[1], [0], [0], [1], [0, 0, 1, 1], [], []>} : vector<16x64xf32>, vector<64x128xf32>, vector<16x128xf32> -> vector<16x128xf32>
    %c632 = arith.constant 632 : index
    %c0_3 = arith.constant 0 : index
    %7 = vector.load %arg2[%c632, %c0_3] : memref<720x128xf32, #tpu.memory_space<vmem>>, vector<1x128xf32>
    %8 = vector.broadcast %7 : vector<1x128xf32> to vector<16x128xf32>
    %9 = arith.addf %6, %8 : vector<16x128xf32>
    %cst_4 = arith.constant 0.000000e+00 : f32
    %10 = vector.broadcast %cst_4 : f32 to vector<16x128xf32>
    %11 = arith.cmpf ogt, %9, %10 : vector<16x128xf32>
    %cst_5 = arith.constant 0.00999999977 : f32
    %12 = vector.broadcast %cst_5 : f32 to vector<16x128xf32>
    %13 = arith.mulf %12, %9 : vector<16x128xf32>
    %14 = arith.select %11, %9, %13 : vector<16x128xi1>, vector<16x128xf32>
    %c64 = arith.constant 64 : index
    %c0_6 = arith.constant 0 : index
    %15 = vector.load %arg2[%c64, %c0_6] : memref<720x128xf32, #tpu.memory_space<vmem>>, vector<128x64xf32>
    %cst_7 = arith.constant dense<0.000000e+00> : vector<16x64xf32>
    %16 = tpu.matmul %14, %15, %cst_7 {dimension_numbers = #tpu.dot_dimension_numbers<[1], [0], [0], [1], [0, 0, 1, 1], [], []>} : vector<16x128xf32>, vector<128x64xf32>, vector<16x64xf32> -> vector<16x64xf32>
    %c640 = arith.constant 640 : index
    %c0_8 = arith.constant 0 : index
    %17 = vector.load %arg2[%c640, %c0_8] : memref<720x128xf32, #tpu.memory_space<vmem>>, vector<1x64xf32>
    %18 = vector.broadcast %17 : vector<1x64xf32> to vector<16x64xf32>
    %19 = arith.addf %16, %18 : vector<16x64xf32>
    %cst_9 = arith.constant 0.000000e+00 : f32
    %20 = vector.broadcast %cst_9 : f32 to vector<16x64xf32>
    %21 = arith.cmpf ogt, %19, %20 : vector<16x64xf32>
    %cst_10 = arith.constant 0.00999999977 : f32
    %22 = vector.broadcast %cst_10 : f32 to vector<16x64xf32>
    %23 = arith.mulf %22, %19 : vector<16x64xf32>
    %24 = arith.select %21, %19, %23 : vector<16x64xi1>, vector<16x64xf32>
    %c192 = arith.constant 192 : index
    %c0_11 = arith.constant 0 : index
    %25 = vector.load %arg2[%c192, %c0_11] : memref<720x128xf32, #tpu.memory_space<vmem>>, vector<64x32xf32>
    %cst_12 = arith.constant dense<0.000000e+00> : vector<16x32xf32>
    %26 = tpu.matmul %24, %25, %cst_12 {dimension_numbers = #tpu.dot_dimension_numbers<[1], [0], [0], [1], [0, 0, 1, 1], [], []>} : vector<16x64xf32>, vector<64x32xf32>, vector<16x32xf32> -> vector<16x32xf32>
    %c648 = arith.constant 648 : index
    %c0_13 = arith.constant 0 : index
    %27 = vector.load %arg2[%c648, %c0_13] : memref<720x128xf32, #tpu.memory_space<vmem>>, vector<1x32xf32>
    %28 = vector.broadcast %27 : vector<1x32xf32> to vector<16x32xf32>
    %29 = arith.addf %26, %28 : vector<16x32xf32>
    %cst_14 = arith.constant 1.000000e+00 : f32
    %30 = vector.broadcast %cst_14 : f32 to vector<16x1xf32>
    %31 = arith.subf %30, %4 : vector<16x1xf32>
    %32 = vector.broadcast %31 : vector<16x1xf32> to vector<16x32xf32>
    %33 = arith.mulf %2, %32 : vector<16x32xf32>
    %34 = vector.broadcast %31 : vector<16x1xf32> to vector<16x32xf32>
    %35 = arith.mulf %3, %34 : vector<16x32xf32>
    %36 = vector.broadcast %31 : vector<16x1xf32> to vector<16x32xf32>
    %37 = arith.mulf %29, %36 : vector<16x32xf32>
    %38 = tpu.concatenate %33, %35, %37 in 0 : vector<16x32xf32>, vector<16x32xf32>, vector<16x32xf32> -> vector<48x32xf32>
    %c656 = arith.constant 656 : index
    %c0_15 = arith.constant 0 : index
    %39 = vector.load %arg2[%c656, %c0_15] : memref<720x128xf32, #tpu.memory_space<vmem>>, vector<1x32xf32>
    %c664 = arith.constant 664 : index
    %c0_16 = arith.constant 0 : index
    %40 = vector.load %arg2[%c664, %c0_16] : memref<720x128xf32, #tpu.memory_space<vmem>>, vector<1x32xf32>
    %cst_17 = arith.constant dense<0.000000e+00> : vector<48xf32>
    %41 = vector.multi_reduction <add>, %38, %cst_17 [1] : vector<48x32xf32> to vector<48xf32>
    %42 = vector.shape_cast %41 : vector<48xf32> to vector<48x1xf32>
    %cst_18 = arith.constant 3.200000e+01 : f32
    %43 = vector.broadcast %cst_18 : f32 to vector<48x1xf32>
    %44 = arith.divf %42, %43 : vector<48x1xf32>
    %45 = arith.mulf %38, %38 : vector<48x32xf32>
    %cst_19 = arith.constant dense<0.000000e+00> : vector<48xf32>
    %46 = vector.multi_reduction <add>, %45, %cst_19 [1] : vector<48x32xf32> to vector<48xf32>
    %47 = vector.shape_cast %46 : vector<48xf32> to vector<48x1xf32>
    %cst_20 = arith.constant 3.200000e+01 : f32
    %48 = vector.broadcast %cst_20 : f32 to vector<48x1xf32>
    %49 = arith.divf %47, %48 : vector<48x1xf32>
    %50 = arith.mulf %44, %44 : vector<48x1xf32>
    %51 = arith.subf %49, %50 : vector<48x1xf32>
    %52 = vector.broadcast %44 : vector<48x1xf32> to vector<48x32xf32>
    %53 = arith.subf %38, %52 : vector<48x32xf32>
    %cst_21 = arith.constant 9.99999974E-6 : f32
    %54 = vector.broadcast %cst_21 : f32 to vector<48x1xf32>
    %55 = arith.addf %51, %54 : vector<48x1xf32>
    %56 = math.rsqrt %55 : vector<48x1xf32>
    %57 = vector.broadcast %56 : vector<48x1xf32> to vector<48x32xf32>
    %58 = arith.mulf %53, %57 : vector<48x32xf32>
    %59 = vector.broadcast %39 : vector<1x32xf32> to vector<48x32xf32>
    %60 = arith.mulf %58, %59 : vector<48x32xf32>
    %61 = vector.broadcast %40 : vector<1x32xf32> to vector<48x32xf32>
    %62 = arith.addf %60, %61 : vector<48x32xf32>
    %c672 = arith.constant 672 : index
    %c0_22 = arith.constant 0 : index
    %63 = vector.load %arg2[%c672, %c0_22] : memref<720x128xf32, #tpu.memory_space<vmem>>, vector<1x32xf32>
    %c680 = arith.constant 680 : index
    %c0_23 = arith.constant 0 : index
    %64 = vector.load %arg2[%c680, %c0_23] : memref<720x128xf32, #tpu.memory_space<vmem>>, vector<1x32xf32>
    %cst_24 = arith.constant dense<0.000000e+00> : vector<48xf32>
    %65 = vector.multi_reduction <add>, %62, %cst_24 [1] : vector<48x32xf32> to vector<48xf32>
    %66 = vector.shape_cast %65 : vector<48xf32> to vector<48x1xf32>
    %cst_25 = arith.constant 3.200000e+01 : f32
    %67 = vector.broadcast %cst_25 : f32 to vector<48x1xf32>
    %68 = arith.divf %66, %67 : vector<48x1xf32>
    %69 = arith.mulf %62, %62 : vector<48x32xf32>
    %cst_26 = arith.constant dense<0.000000e+00> : vector<48xf32>
    %70 = vector.multi_reduction <add>, %69, %cst_26 [1] : vector<48x32xf32> to vector<48xf32>
    %71 = vector.shape_cast %70 : vector<48xf32> to vector<48x1xf32>
    %cst_27 = arith.constant 3.200000e+01 : f32
    %72 = vector.broadcast %cst_27 : f32 to vector<48x1xf32>
    %73 = arith.divf %71, %72 : vector<48x1xf32>
    %74 = arith.mulf %68, %68 : vector<48x1xf32>
    %75 = arith.subf %73, %74 : vector<48x1xf32>
    %76 = vector.broadcast %68 : vector<48x1xf32> to vector<48x32xf32>
    %77 = arith.subf %62, %76 : vector<48x32xf32>
    %cst_28 = arith.constant 9.99999974E-6 : f32
    %78 = vector.broadcast %cst_28 : f32 to vector<48x1xf32>
    %79 = arith.addf %75, %78 : vector<48x1xf32>
    %80 = math.rsqrt %79 : vector<48x1xf32>
    %81 = vector.broadcast %80 : vector<48x1xf32> to vector<48x32xf32>
    %82 = arith.mulf %77, %81 : vector<48x32xf32>
    %83 = vector.broadcast %63 : vector<1x32xf32> to vector<48x32xf32>
    %84 = arith.mulf %82, %83 : vector<48x32xf32>
    %85 = vector.broadcast %64 : vector<1x32xf32> to vector<48x32xf32>
    %86 = arith.addf %84, %85 : vector<48x32xf32>
    %c256 = arith.constant 256 : index
    %c0_29 = arith.constant 0 : index
    %87 = vector.load %arg2[%c256, %c0_29] : memref<720x128xf32, #tpu.memory_space<vmem>>, vector<32x96xf32>
    %cst_30 = arith.constant dense<0.000000e+00> : vector<48x96xf32>
    %88 = tpu.matmul %86, %87, %cst_30 {dimension_numbers = #tpu.dot_dimension_numbers<[1], [0], [0], [1], [0, 0, 1, 1], [], []>} : vector<48x32xf32>, vector<32x96xf32>, vector<48x96xf32> -> vector<48x96xf32>
    %c688 = arith.constant 688 : index
    %c0_31 = arith.constant 0 : index
    %89 = vector.load %arg2[%c688, %c0_31] : memref<720x128xf32, #tpu.memory_space<vmem>>, vector<1x96xf32>
    %90 = vector.broadcast %89 : vector<1x96xf32> to vector<48x96xf32>
    %91 = arith.addf %88, %90 : vector<48x96xf32>
    %92 = vector.extract_strided_slice %91 {offsets = [0, 0], sizes = [48, 32], strides = [1, 1]} : vector<48x96xf32> to vector<48x32xf32>
    %93 = vector.extract_strided_slice %91 {offsets = [0, 32], sizes = [48, 32], strides = [1, 1]} : vector<48x96xf32> to vector<48x32xf32>
    %94 = vector.extract_strided_slice %91 {offsets = [0, 64], sizes = [48, 32], strides = [1, 1]} : vector<48x96xf32> to vector<48x32xf32>
    %95 = vector.extract_strided_slice %93 {offsets = [0, 0], sizes = [16, 32], strides = [1, 1]} : vector<48x32xf32> to vector<16x32xf32>
    %96 = vector.extract_strided_slice %93 {offsets = [16, 0], sizes = [16, 32], strides = [1, 1]} : vector<48x32xf32> to vector<16x32xf32>
    %97 = vector.extract_strided_slice %93 {offsets = [32, 0], sizes = [16, 32], strides = [1, 1]} : vector<48x32xf32> to vector<16x32xf32>
    %98 = tpu.concatenate %95, %96, %97 in 1 : vector<16x32xf32>, vector<16x32xf32>, vector<16x32xf32> -> vector<16x96xf32>
    %99 = vector.extract_strided_slice %94 {offsets = [0, 0], sizes = [16, 32], strides = [1, 1]} : vector<48x32xf32> to vector<16x32xf32>
    %100 = vector.extract_strided_slice %94 {offsets = [16, 0], sizes = [16, 32], strides = [1, 1]} : vector<48x32xf32> to vector<16x32xf32>
    %101 = vector.extract_strided_slice %94 {offsets = [32, 0], sizes = [16, 32], strides = [1, 1]} : vector<48x32xf32> to vector<16x32xf32>
    %102 = tpu.concatenate %99, %100, %101 in 1 : vector<16x32xf32>, vector<16x32xf32>, vector<16x32xf32> -> vector<16x96xf32>
    %103 = tpu.concatenate %98, %98, %98 in 0 : vector<16x96xf32>, vector<16x96xf32>, vector<16x96xf32> -> vector<48x96xf32>
    %104 = tpu.concatenate %102, %102, %102 in 0 : vector<16x96xf32>, vector<16x96xf32>, vector<16x96xf32> -> vector<48x96xf32>
    %105 = tpu.concatenate %92, %92, %92 in 1 : vector<48x32xf32>, vector<48x32xf32>, vector<48x32xf32> -> vector<48x96xf32>
    %106 = arith.mulf %105, %103 : vector<48x96xf32>
    %c320 = arith.constant 320 : index
    %c0_32 = arith.constant 0 : index
    %107 = vector.load %arg2[%c320, %c0_32] : memref<720x128xf32, #tpu.memory_space<vmem>>, vector<96x12xf32>
    %cst_33 = arith.constant dense<0.000000e+00> : vector<48x12xf32>
    %108 = tpu.matmul %106, %107, %cst_33 {dimension_numbers = #tpu.dot_dimension_numbers<[1], [0], [0], [1], [0, 0, 1, 1], [], []>} : vector<48x96xf32>, vector<96x12xf32>, vector<48x12xf32> -> vector<48x12xf32>
    %109 = vector.extract_strided_slice %108 {offsets = [0, 0], sizes = [48, 4], strides = [1, 1]} : vector<48x12xf32> to vector<48x4xf32>
    %110 = vector.extract_strided_slice %108 {offsets = [0, 4], sizes = [48, 4], strides = [1, 1]} : vector<48x12xf32> to vector<48x4xf32>
    %111 = vector.extract_strided_slice %108 {offsets = [0, 8], sizes = [48, 4], strides = [1, 1]} : vector<48x12xf32> to vector<48x4xf32>
    %112 = arith.maximumf %109, %110 : vector<48x4xf32>
    %113 = arith.maximumf %112, %111 : vector<48x4xf32>
    %114 = tpu.concatenate %113, %113, %113 in 1 : vector<48x4xf32>, vector<48x4xf32>, vector<48x4xf32> -> vector<48x12xf32>
    %115 = arith.subf %108, %114 : vector<48x12xf32>
    %116 = math.exp %115 : vector<48x12xf32>
    %117 = vector.extract_strided_slice %116 {offsets = [0, 0], sizes = [48, 4], strides = [1, 1]} : vector<48x12xf32> to vector<48x4xf32>
    %118 = vector.extract_strided_slice %116 {offsets = [0, 4], sizes = [48, 4], strides = [1, 1]} : vector<48x12xf32> to vector<48x4xf32>
    %119 = arith.addf %117, %118 : vector<48x4xf32>
    %120 = vector.extract_strided_slice %116 {offsets = [0, 8], sizes = [48, 4], strides = [1, 1]} : vector<48x12xf32> to vector<48x4xf32>
    %121 = arith.addf %119, %120 : vector<48x4xf32>
    %122 = tpu.concatenate %121, %121, %121 in 1 : vector<48x4xf32>, vector<48x4xf32>, vector<48x4xf32> -> vector<48x12xf32>
    %123 = arith.divf %116, %122 : vector<48x12xf32>
    %c416 = arith.constant 416 : index
    %c0_34 = arith.constant 0 : index
    %124 = vector.load %arg2[%c416, %c0_34] : memref<720x128xf32, #tpu.memory_space<vmem>>, vector<12x96xf32>
    %cst_35 = arith.constant dense<0.000000e+00> : vector<48x96xf32>
    %125 = tpu.matmul %123, %124, %cst_35 {dimension_numbers = #tpu.dot_dimension_numbers<[1], [0], [0], [1], [0, 0, 1, 1], [], []>} : vector<48x12xf32>, vector<12x96xf32>, vector<48x96xf32> -> vector<48x96xf32>
    %126 = arith.mulf %125, %104 : vector<48x96xf32>
    %127 = vector.extract_strided_slice %126 {offsets = [0, 0], sizes = [48, 32], strides = [1, 1]} : vector<48x96xf32> to vector<48x32xf32>
    %128 = vector.extract_strided_slice %126 {offsets = [0, 32], sizes = [48, 32], strides = [1, 1]} : vector<48x96xf32> to vector<48x32xf32>
    %129 = arith.addf %127, %128 : vector<48x32xf32>
    %130 = vector.extract_strided_slice %126 {offsets = [0, 64], sizes = [48, 32], strides = [1, 1]} : vector<48x96xf32> to vector<48x32xf32>
    %131 = arith.addf %129, %130 : vector<48x32xf32>
    %c288 = arith.constant 288 : index
    %c0_36 = arith.constant 0 : index
    %132 = vector.load %arg2[%c288, %c0_36] : memref<720x128xf32, #tpu.memory_space<vmem>>, vector<32x32xf32>
    %cst_37 = arith.constant dense<0.000000e+00> : vector<48x32xf32>
    %133 = tpu.matmul %131, %132, %cst_37 {dimension_numbers = #tpu.dot_dimension_numbers<[1], [0], [0], [1], [0, 0, 1, 1], [], []>} : vector<48x32xf32>, vector<32x32xf32>, vector<48x32xf32> -> vector<48x32xf32>
    %134 = vector.extract_strided_slice %133 {offsets = [0, 0], sizes = [16, 32], strides = [1, 1]} : vector<48x32xf32> to vector<16x32xf32>
    %135 = vector.extract_strided_slice %133 {offsets = [16, 0], sizes = [16, 32], strides = [1, 1]} : vector<48x32xf32> to vector<16x32xf32>
    %136 = vector.extract_strided_slice %133 {offsets = [32, 0], sizes = [16, 32], strides = [1, 1]} : vector<48x32xf32> to vector<16x32xf32>
    %137 = tpu.concatenate %134, %135, %136 in 1 : vector<16x32xf32>, vector<16x32xf32>, vector<16x32xf32> -> vector<16x96xf32>
    %138 = vector.extract_strided_slice %123 {offsets = [0, 0], sizes = [16, 12], strides = [1, 1]} : vector<48x12xf32> to vector<16x12xf32>
    %139 = vector.extract_strided_slice %123 {offsets = [16, 0], sizes = [16, 12], strides = [1, 1]} : vector<48x12xf32> to vector<16x12xf32>
    %140 = vector.extract_strided_slice %123 {offsets = [32, 0], sizes = [16, 12], strides = [1, 1]} : vector<48x12xf32> to vector<16x12xf32>
    %141 = tpu.concatenate %138, %139, %140 in 1 : vector<16x12xf32>, vector<16x12xf32>, vector<16x12xf32> -> vector<16x36xf32>
    %142 = tpu.concatenate %137, %141 in 1 : vector<16x96xf32>, vector<16x36xf32> -> vector<16x132xf32>
    %c432 = arith.constant 432 : index
    %c0_38 = arith.constant 0 : index
    %143 = vector.load %arg2[%c432, %c0_38] : memref<720x128xf32, #tpu.memory_space<vmem>>, vector<132x32xf32>
    %cst_39 = arith.constant dense<0.000000e+00> : vector<16x32xf32>
    %144 = tpu.matmul %142, %143, %cst_39 {dimension_numbers = #tpu.dot_dimension_numbers<[1], [0], [0], [1], [0, 0, 1, 1], [], []>} : vector<16x132xf32>, vector<132x32xf32>, vector<16x32xf32> -> vector<16x32xf32>
    %c696 = arith.constant 696 : index
    %c0_40 = arith.constant 0 : index
    %145 = vector.load %arg2[%c696, %c0_40] : memref<720x128xf32, #tpu.memory_space<vmem>>, vector<1x32xf32>
    %146 = vector.broadcast %145 : vector<1x32xf32> to vector<16x32xf32>
    %147 = arith.addf %144, %146 : vector<16x32xf32>
    %cst_41 = arith.constant 0.000000e+00 : f32
    %148 = vector.broadcast %cst_41 : f32 to vector<16x32xf32>
    %149 = arith.cmpf ogt, %147, %148 : vector<16x32xf32>
    %cst_42 = arith.constant 0.00999999977 : f32
    %150 = vector.broadcast %cst_42 : f32 to vector<16x32xf32>
    %151 = arith.mulf %150, %147 : vector<16x32xf32>
    %152 = arith.select %149, %147, %151 : vector<16x32xi1>, vector<16x32xf32>
    %c568 = arith.constant 568 : index
    %c0_43 = arith.constant 0 : index
    %153 = vector.load %arg2[%c568, %c0_43] : memref<720x128xf32, #tpu.memory_space<vmem>>, vector<32x32xf32>
    %cst_44 = arith.constant dense<0.000000e+00> : vector<16x32xf32>
    %154 = tpu.matmul %152, %153, %cst_44 {dimension_numbers = #tpu.dot_dimension_numbers<[1], [0], [0], [1], [0, 0, 1, 1], [], []>} : vector<16x32xf32>, vector<32x32xf32>, vector<16x32xf32> -> vector<16x32xf32>
    %c704 = arith.constant 704 : index
    %c0_45 = arith.constant 0 : index
    %155 = vector.load %arg2[%c704, %c0_45] : memref<720x128xf32, #tpu.memory_space<vmem>>, vector<1x32xf32>
    %156 = vector.broadcast %155 : vector<1x32xf32> to vector<16x32xf32>
    %157 = arith.addf %154, %156 : vector<16x32xf32>
    %cst_46 = arith.constant 0.000000e+00 : f32
    %158 = vector.broadcast %cst_46 : f32 to vector<16x32xf32>
    %159 = arith.cmpf ogt, %157, %158 : vector<16x32xf32>
    %cst_47 = arith.constant 0.00999999977 : f32
    %160 = vector.broadcast %cst_47 : f32 to vector<16x32xf32>
    %161 = arith.mulf %160, %157 : vector<16x32xf32>
    %162 = arith.select %159, %157, %161 : vector<16x32xi1>, vector<16x32xf32>
    %c600 = arith.constant 600 : index
    %c0_48 = arith.constant 0 : index
    %163 = vector.load %arg2[%c600, %c0_48] : memref<720x128xf32, #tpu.memory_space<vmem>>, vector<32x32xf32>
    %cst_49 = arith.constant dense<0.000000e+00> : vector<16x32xf32>
    %164 = tpu.matmul %162, %163, %cst_49 {dimension_numbers = #tpu.dot_dimension_numbers<[1], [0], [0], [1], [0, 0, 1, 1], [], []>} : vector<16x32xf32>, vector<32x32xf32>, vector<16x32xf32> -> vector<16x32xf32>
    %c712 = arith.constant 712 : index
    %c0_50 = arith.constant 0 : index
    %165 = vector.load %arg2[%c712, %c0_50] : memref<720x128xf32, #tpu.memory_space<vmem>>, vector<1x32xf32>
    %166 = vector.broadcast %165 : vector<1x32xf32> to vector<16x32xf32>
    %167 = arith.addf %164, %166 : vector<16x32xf32>
    %cst_51 = arith.constant 0.000000e+00 : f32
    %168 = vector.broadcast %cst_51 : f32 to vector<16x32xf32>
    %169 = tpu.concatenate %147, %29, %167, %168 in 1 : vector<16x32xf32>, vector<16x32xf32>, vector<16x32xf32>, vector<16x32xf32> -> vector<16x128xf32>
    %c0_52 = arith.constant 0 : index
    %c0_53 = arith.constant 0 : index
    %170 = vector.load %arg3[%c0_52, %c0_53] : memref<16x128xf32, #tpu.memory_space<vmem>>, vector<16x128xf32>
    tpu.vector_store %arg3[%c0_52, %c0_53], %169 {strides = array<i32>} : memref<16x128xf32, #tpu.memory_space<vmem>>, vector<16x128xf32>,
    return
  }
  func.func @transform_0(%arg0: i32) -> (i32, i32) {
    %c0_i32 = arith.constant 0 : i32
    %c0_i32_0 = arith.constant 0 : i32
    return %arg0, %c0_i32 : i32, i32
  }
  func.func @transform_1(%arg0: i32) -> (i32, i32) {
    %c0_i32 = arith.constant 0 : i32
    %c0_i32_0 = arith.constant 0 : i32
    %c0_i32_1 = arith.constant 0 : i32
    return %c0_i32, %c0_i32_0 : i32, i32
  }
  func.func @transform_2(%arg0: i32) -> (i32, i32) {
    %c0_i32 = arith.constant 0 : i32
    %c0_i32_0 = arith.constant 0 : i32
    return %arg0, %c0_i32 : i32, i32
  }
}

</mosaic_0001>

<bundles_post_ra>
// kernel: tpu_custom_call.1
= control target key start
LH: loop header
LB: loop body
LE: loop exit
PB: predicated region body
PF: predicated region fallthrough
CT: control target
= control target key end

     0   :  { %7 = vsyncpa [#allocation3], 0  ;;  %s2395_s0 = inlined_call_operand.hbm [shape: f32[16,256], index: 0, kind: input, shape index: {}]   ;;  %s2396_s1 = inlined_call_operand.hbm [shape: f32[720,128], index: 1, kind: input, shape index: {}]   ;;  %s2397_s2 = inlined_call_operand.hbm [shape: f32[16,128], index: 2, kind: output, shape index: {}]  }
   0x1   :  { %8 = vsyncpa [#allocation6], 0 }
   0x2   :  { %9 = vsyncpa [#allocation4], 0  ;;  %s14_s11 = sshll.u32 %s2395_s0, 4  ;;  %s1808_s12 = smov [#allocation2]   ;;  %s15_s11 = int_to_ptr.hbm [resolvable:$true] %s14_s11 }
   0x3   :  { %s16_s13 = sshll.u32 %s1808_s12, 4  ;;  %s27_s16 = sshll.u32 %s2396_s1, 4  ;;  %s17_s13 = int_to_ptr.vmem [resolvable:$true] %s16_s13  ;;  %s28_s16 = int_to_ptr.hbm [resolvable:$true] %s27_s16 }
   0x4   :  { %s1809_s17 = smov 256   ;;  %s1810_s18 = smov 16  }
   0x5   :  { %22 = dma.hbm_to_vmem [thread:$0]  %s15_s11, 512, %s17_s13, [#allocation3], %s1809_s17, %s1809_s17, %s1810_s18  }
   0x6   :  { %s1811_s19 = smov [#allocation5]   ;;  %s1812_s21 = smov 128  }
   0x7   :  { %s29_s20 = sshll.u32 %s1811_s19, 4  ;;  %s1813_s22 = smov 8   ;;  %s30_s20 = int_to_ptr.vmem [resolvable:$true] %s29_s20 }
   0x8   :  { %35 = dma.hbm_to_vmem [thread:$0]  %s28_s16, 11520, %s30_s20, [#allocation6], %s1812_s21, %s1812_s21, %s1813_s22  }
   0x9   :  { %1802 = dma.done.wait [#allocation3], 512  }
   0xa   :  { %1803 = vsyncadd [#allocation3], 4294966784 }
   0xb   :  { %1804 = dma.done.wait [#allocation6], 11520  }
   0xc   :  { %1805 = vsyncadd [#allocation6], 4294955776  ;;  %v1814_v0 = vmov 0   ;;  %v55_v1 = vld [vmem:[#allocation5 + $0x38] sm:$0xff]  ;;  %v54_v2 = vld [vmem:[#allocation5 + $0x30] sm:$0xff]  ;;  %vm58_vm0 = vcmask 523264  }
   0xd   :  { %1668 = vset.pattern.permute.xlu0 %v1814_v0  ;;  %v45_v3 = vld [vmem:[#allocation2 + $0x8] sm:$0xff]  ;;  %73 = vmatpush.msra.mxu0 %v55_v1  ;;  %v47_v6 = vld [vmem:[#allocation2 + $0x18] sm:$0xff]  ;;  %v52_v7 = vld [vmem:[#allocation5 + $0x20] sm:$0xff]  ;;  %s1815_s0 = smov 64   ;;  %s1816_s1 = smov 96   ;;  %vm232_vm3 = vcmask 261120  }
   0xe   :  { %v180_v4 = vsub.f32 1.0, %v45_v3  ;;  %v53_v5 = vld [vmem:[#allocation5 + $0x28] sm:$0xff]  ;;  %v51_v8 = vld [vmem:[#allocation5 + $0x18] sm:$0xff]  ;;  %v181_v9 = vsub.f32 1.0, %v47_v6  ;;  %v50_v11 = vld [vmem:[#allocation5 + $0x10] sm:$0xff]  ;;  %s1818_s23 = smov 32  }
   0xf   :  { %74 = vmatpush.msra.mxu0 %v54_v2  ;;  %v109_v10 = vld [vmem:[#allocation5 + $0xb8] sm:$0xff]  ;;  %v49_v12 = vld [vmem:[#allocation5 + $0x8] sm:$0xff]  ;;  %v48_v13 = vld [vmem:[#allocation5] sm:$0xff]  ;;  %s1819_s24 = smov 120   ;;  %s1820_s25 = smov 124  }
  0x10   :  { %184 = vperm.xlu0 %1668, %v180_v4   ;;  %112 = vmatpush.msra.mxu1 %v109_v10  ;;  %v44_v14 = vld [vmem:[#allocation2] sm:$0xff]  ;;  %v46_v15 = vld [vmem:[#allocation2 + $0x10] sm:$0xff]  ;;  %v107_v17 = vld [vmem:[#allocation5 + $0xa8] sm:$0xff]  ;;  %s1821_s26 = smov 4   ;;  %s1822_s27 = smov 12  }
  0x11   :  { %75 = vmatpush.msra.mxu0 %v53_v5  ;;  %v108_v16 = vld [vmem:[#allocation5 + $0xb0] sm:$0xff]  ;;  %v106_v18 = vld [vmem:[#allocation5 + $0xa0] sm:$0xff]  ;;  %v105_v19 = vld [vmem:[#allocation5 + $0x98] sm:$0xff]  ;;  %s1823_s28 = smov 24   ;;  %s1824_s29 = smov [#allocation7]  }
  0x12   :  { %113 = vmatpush.msra.mxu1 %v108_v16  ;;  %v104_v20 = vld [vmem:[#allocation5 + $0x90] sm:$0xff]  ;;  %v103_v21 = vld [vmem:[#allocation5 + $0x88] sm:$0xff]  ;;  %v102_v22 = vld [vmem:[#allocation5 + $0x80] sm:$0xff]  ;;  %s1595_s30 = sshll.u32 %s1824_s29, 4  ;;  %s1597_s5 = sshll.u32 %s2397_s2, 4  ;;  %s1596_s30 = int_to_ptr.vmem [resolvable:$true] %s1595_s30  ;;  %s1598_s5 = int_to_ptr.hbm [resolvable:$true] %s1597_s5 }
  0x13   :  { %76 = vmatpush.msra.mxu0 %v52_v7  ;;  %v101_v23 = vld [vmem:[#allocation5 + $0x78] sm:$0xff]  ;;  %v100_v24 = vld [vmem:[#allocation5 + $0x70] sm:$0xff]  ;;  %v99_v25 = vld [vmem:[#allocation5 + $0x68] sm:$0xff] }
  0x14   :  { %114 = vmatpush.msra.mxu1 %v107_v17  ;;  %v98_v26 = vld [vmem:[#allocation5 + $0x60] sm:$0xff]  ;;  %v97_v27 = vld [vmem:[#allocation5 + $0x58] sm:$0xff]  ;;  %v96_v28 = vld [vmem:[#allocation5 + $0x50] sm:$0xff] }
  0x15   :  { %77 = vmatpush.msra.mxu0 %v51_v8  ;;  %v95_v29 = vld [vmem:[#allocation5 + $0x48] sm:$0xff]  ;;  %v94_v30 = vld [vmem:[#allocation5 + $0x40] sm:$0xff]  ;;  %v1669_v37 = vld [vmem:[#allocation5 + $0x278] ss:$0 sm:$0xff] }
  0x16   :  { %115 = vmatpush.msra.mxu1 %v106_v18  ;;  %v148_v48 = vld [vmem:[#allocation5 + $0xf8] sm:$0xff]  ;;  %v147_v49 = vld [vmem:[#allocation5 + $0xf0] sm:$0xff]  ;;  %v146_v50 = vld [vmem:[#allocation5 + $0xe8] sm:$0xff] }
  0x17   :  { %78 = vmatpush.msra.mxu0 %v50_v11  ;;  %165 = vmatpush.msra.mxu2 %v148_v48  ;;  %v145_v51 = vld [vmem:[#allocation5 + $0xe0] sm:$0xff]  ;;  %v144_v52 = vld [vmem:[#allocation5 + $0xd8] sm:$0xff]  ;;  %v143_v55 = vld [vmem:[#allocation5 + $0xd0] sm:$0xff] }
  0x18   :  { %189 = vperm.xlu0 %1668, %v181_v9   ;;  %116 = vmatpush.msra.mxu1 %v105_v19  ;;  %v142_v57 = vld [vmem:[#allocation5 + $0xc8] sm:$0xff]  ;;  %v141_v59 = vld [vmem:[#allocation5 + $0xc0] sm:$0xff] }
  0x19   :  { %79 = vmatpush.msra.mxu0 %v49_v12  ;;  %166 = vmatpush.msra.mxu2 %v147_v49  ;;  %v1670_v60 = vld [vmem:[#allocation5 + $0x280] ss:$0 sm:$0xff] }
  0x1a   :  { %117 = vmatpush.msra.mxu1 %v104_v20 }
  0x1b   :  { %80 = vmatpush.msra.mxu0 %v48_v13  ;;  %167 = vmatpush.msra.mxu2 %v146_v50  ;;  %v1671_v13 = vld [vmem:[#allocation5 + $0x288] ss:$0 sm:$0xff] }
  0x1c   :  { %1611 = vmatmul.msk.f32.vlgmr.msra.gmra.mxu0 %vm58_vm0, %v44_v14  ;;  %118 = vmatpush.msra.mxu1 %v103_v21 }
  0x1d   :  { %168 = vmatpush.msra.mxu2 %v145_v51 }
  0x1e   :  { %119 = vmatpush.msra.mxu1 %v102_v22 }
  0x1f   :  { %169 = vmatpush.msra.mxu2 %v144_v52 }
  0x20   :  { %120 = vmatpush.msra.mxu1 %v101_v23 }
  0x21   :  { %170 = vmatpush.msra.mxu2 %v143_v55 }
  0x22   :  { %121 = vmatpush.msra.mxu1 %v100_v24 }
  0x23   :  { %171 = vmatpush.msra.mxu2 %v142_v57 }
  0x24   :  { %1612 = vmatmul.msk.f32.gmra.mxu0 %vm58_vm0, %v46_v15  ;;  %122 = vmatpush.msra.mxu1 %v99_v25 }
  0x25   :  { %172 = vmatpush.msra.mxu2 %v141_v59 }
  0x26   :  { %123 = vmatpush.msra.mxu1 %v98_v26 }
  0x28   :  { %124 = vmatpush.msra.mxu1 %v97_v27 }
  0x2a   :  { %125 = vmatpush.msra.mxu1 %v96_v28 }
  0x2c   :  { %126 = vmatpush.msra.mxu1 %v95_v29 }
  0x2e   :  { %127 = vmatpush.msra.mxu1 %v94_v30 }
  0x82   :  { %v1851_v31 = vpop.permute.xlu0 %184 }
  0x83   :  { %v1854_v32 = vmul.f32 %v1851_v31, %v44_v14 }
  0x85   :  { %214 = vrot.lane.b32.xlu2 %v1854_v32, %s1815_s0  ;;  %198 = vrot.lane.b32.xlu1 %v1854_v32, %s1816_s1  ;;  %v264_v36 = vmul.f32 %v1854_v32, %v1854_v32 }
  0x8a   :  { %v1860_v33 = vpop.permute.xlu0 %189 }
  0x8b   :  { %v1863_v34 = vmul.f32 %v1860_v33, %v46_v15 }
  0x8d   :  { %200 = vrot.lane.b32.xlu1 %v1863_v34, %s1816_s1  ;;  %v265_v35 = vmul.f32 %v1863_v34, %v1863_v34  ;;  %216 = vrot.lane.b32.xlu2 %v1863_v34, %s1815_s0 }
  0x8f   :  { %278 = vrot.lane.b32.xlu0 %v265_v35, %s1815_s0 }
  0x95   :  { %276 = vrot.lane.b32.xlu1 %v264_v36, %s1815_s0  ;;  %v1673_v36 = vld [vmem:[#allocation5 + $0x298] ss:$0 sm:$0xff] }
  0x99   :  { %v82_v38 = vpop.f32.mrf.mxu0 }
  0x9a   :  { %v83_v39 = vadd.f32 %v1669_v37, %v82_v38 }
  0x9c   :  { %vm88_vm1 = vcmp.gt.f32.partialorder %v83_v39, 0.0  ;;  %v90_v40 = vmul.f32 0.01, %v83_v39 }
  0x9e   :  { %v92_v41 = vsel %vm88_vm1, %v83_v39, %v90_v40 }
  0x9f   :  { %128 = vmatmul.f32.vlgmr.msra.gmra.mxu1 %v92_v41 }
  0xa1   :  { %v85_v42 = vpop.f32.mrf.mxu0 }
  0xa2   :  { %v86_v43 = vadd.f32 %v1669_v37, %v85_v42  ;;  %v1672_v37 = vld [vmem:[#allocation5 + $0x290] ss:$0 sm:$0xff]  ;;  %v1817_v42 = vmov 32.0  }
  0xa3   :  { %1680 = vrcp.f32 %v1817_v42 }
  0xa4   :  { %vm89_vm2 = vcmp.gt.f32.partialorder %v86_v43, 0.0  ;;  %v91_v44 = vmul.f32 0.01, %v86_v43 }
  0xa6   :  { %v93_v45 = vsel %vm89_vm2, %v86_v43, %v91_v44 }
  0xa7   :  { %131 = vmatmul.f32.gmra.mxu1 %v93_v45 }
  0xa9   :  { %v1681_v44 = vpop.eup %1680 }
  0xaa   :  { %vm256_vm6 = vweird.f32 %v1681_v44 }
  0xdf   :  { %v215_v46 = vpop.permute.xlu2 %214 }
  0xe0   :  { %v233_v47 = vsel %vm232_vm3, %v215_v46, 0.0  ;;  %v252_v46 = vmul.f32 32.0, %v1681_v44 }
  0xe1   :  { %234 = vadd.xlane.f32.xlu2 %v233_v47 }
  0xe2   :  { %v253_v48 = vsub.f32 1.0, %v252_v46 }
  0xe4   :  { %v254_v49 = vmul.f32 %v1681_v44, %v253_v48 }
  0xe6   :  { %v255_v50 = vadd.f32 %v1681_v44, %v254_v49 }
  0xe7   :  { %v217_v3 = vpop.permute.xlu2 %216 }
  0xe8   :  { %v236_v7 = vsel %vm232_vm3, %v217_v3, 0.0  ;;  %v1930_v51 = vsel %vm256_vm6, %v1681_v44, %v255_v50 }
  0xf7   :  { %v1876_v53 = vpop.permute.xlu1 %198 }
  0xf8   :  { %v266_v54 = vmul.f32 %v1876_v53, %v1876_v53  ;;  %218 = vrot.lane.b32.xlu1 %v1876_v53, %s1815_s0 }
  0xfa   :  { %280 = vrot.lane.b32.xlu2 %v266_v54, %s1815_s0 }
  0xff   :  { %v1883_v56 = vpop.permute.xlu1 %200 }
 0x100   :  { %v267_v58 = vmul.f32 %v1883_v56, %v1883_v56  ;;  %220 = vrot.lane.b32.xlu0 %v1883_v56, %s1815_s0 }
 0x101   :  { %v279_v62 = vpop.permute.xlu0 %278 }
 0x102   :  { %282 = vrot.lane.b32.xlu1 %v267_v58, %s1815_s0  ;;  %v297_v1 = vsel %vm232_vm3, %v279_v62, 0.0 }
 0x107   :  { %v277_v6 = vpop.permute.xlu1 %276 }
 0x108   :  { %v294_v9 = vsel %vm232_vm3, %v277_v6, 0.0 }
 0x11c   :  { %v129_v61 = vpop.f32.mrf.mxu1 }
 0x11d   :  { %v130_v63 = vadd.f32 %v1670_v60, %v129_v61 }
 0x11f   :  { %v137_v0 = vmul.f32 0.01, %v130_v63  ;;  %vm135_vm4 = vcmp.gt.f32.partialorder %v130_v63, 0.0 }
 0x121   :  { %v139_v2 = vsel %vm135_vm4, %v130_v63, %v137_v0 }
 0x122   :  { %1613 = vmatmul.msk.f32.vlgmr.msra.gmra.mxu2 %vm58_vm0, %v139_v2 }
 0x123   :  { %298 = vadd.xlane.f32.xlu2 %v297_v1 }
 0x124   :  { %v132_v4 = vpop.f32.mrf.mxu1 }
 0x125   :  { %v133_v5 = vadd.f32 %v1670_v60, %v132_v4 }
 0x127   :  { %v138_v8 = vmul.f32 0.01, %v133_v5  ;;  %vm136_vm5 = vcmp.gt.f32.partialorder %v133_v5, 0.0 }
 0x129   :  { %v140_v10 = vsel %vm136_vm5, %v133_v5, %v138_v8 }
 0x12a   :  { %237 = vadd.xlane.f32.xlu0 %v236_v7  ;;  %1614 = vmatmul.msk.f32.gmra.mxu2 %vm58_vm0, %v140_v10 }
 0x12c   :  { %295 = vadd.xlane.f32.xlu1 %v294_v9 }
 0x154   :  { %v235_v20 = vpop.xlane.xlu2 %234 }
 0x155   :  { %v258_v52 = vmul.f32 %v1930_v51, %v235_v20 }
 0x157   :  { %v318_v54 = vmul.f32 %v258_v52, %v258_v52 }
 0x15c   :  { %v281_v21 = vpop.permute.xlu2 %280 }
 0x15d   :  { %v300_v35 = vsel %vm232_vm3, %v281_v21, 0.0 }
 0x16a   :  { %v219_v11 = vpop.permute.xlu1 %218 }
 0x16b   :  { %v239_v12 = vsel %vm232_vm3, %v219_v11, 0.0 }
 0x16c   :  { %240 = vadd.xlane.f32.xlu2 %v239_v12 }
 0x172   :  { %v221_v26 = vpop.permute.xlu0 %220 }
 0x173   :  { %v242_v29 = vsel %vm232_vm3, %v221_v26, 0.0 }
 0x174   :  { %v283_v30 = vpop.permute.xlu1 %282 }
 0x196   :  { %v299_v22 = vpop.xlane.xlu2 %298 }
 0x197   :  { %v313_v61 = vmul.f32 %v299_v22, %v1930_v51 }
 0x19d   :  { %v238_v27 = vpop.xlane.xlu0 %237 }
 0x19e   :  { %v1935_v57 = vmul.f32 %v1930_v51, %v238_v27 }
 0x19f   :  { %v296_v43 = vpop.xlane.xlu1 %295 }
 0x1a0   :  { %v312_v55 = vmul.f32 %v296_v43, %v1930_v51  ;;  %v319_v60 = vmul.f32 %v1935_v57, %v1935_v57 }
 0x1a2   :  { %v324_v59 = vsub.f32 %v312_v55, %v318_v54  ;;  %v325_v0 = vsub.f32 %v313_v61, %v319_v60 }
 0x1a4   :  { %v336_v62 = vadd.f32 1e-05, %v324_v59  ;;  %v337_v4 = vadd.f32 1e-05, %v325_v0 }
 0x1a5   :  { %v174_v14 = vpop.f32.mrf.mxu2 }
 0x1a6   :  { %v1896_v15 = vadd.f32 %v1671_v13, %v174_v14  ;;  %1682 = vrsqrt.f32 %v336_v62  ;;  %vm348_vm7 = vweird.f32 %v336_v62  ;;  %vm358_vm10 = vweird.f32 %v337_v4 }
 0x1a7   :  { %1684 = vrsqrt.f32 %v337_v4 }
 0x1a8   :  { %v194_v16 = vmul.f32 %v1851_v31, %v1896_v15  ;;  %v303_v31 = vsel %vm232_vm3, %v283_v30, 0.0 }
 0x1aa   :  { %206 = vrot.lane.b32.xlu2 %v194_v16, %s1815_s0 }
 0x1ac   :  { %v1683_v7 = vpop.eup %1682 }
 0x1ad   :  { %v177_v17 = vpop.f32.mrf.mxu2  ;;  %v343_v10 = vmul.f32 %v1683_v7, %v336_v62  ;;  %v1685_v16 = vpop.eup %1684  ;;  %vm349_vm8 = vweird.f32 %v1683_v7 }
 0x1ae   :  { %v1901_v18 = vadd.f32 %v1671_v13, %v177_v17  ;;  %v353_v21 = vmul.f32 %v1685_v16, %v337_v4  ;;  %vm350_vm9 = vmor %vm348_vm7, %vm349_vm8  ;;  %vm359_vm11 = vweird.f32 %v1685_v16 }
 0x1af   :  { %vm360_vm13 = vmor %vm358_vm10, %vm359_vm11 }
 0x1b0   :  { %v195_v19 = vmul.f32 %v1860_v33, %v1901_v18 }
 0x1b2   :  { %208 = vrot.lane.b32.xlu0 %v195_v19, %s1815_s0  ;;  %v344_v19 = vmul.f32 %v1683_v7, %v343_v10 }
 0x1b4   :  { %v345_v22 = vmul.f32 0.5, %v344_v19 }
 0x1b6   :  { %v346_v27 = vsub.f32 1.5, %v345_v22 }
 0x1df   :  { %v1906_v23 = vpop.xlane.xlu2 %240 }
 0x1e0   :  { %v260_v9 = vmul.f32 %v1930_v51, %v1906_v23 }
 0x1e2   :  { %v320_v12 = vmul.f32 %v260_v9, %v260_v9 }
 0x204   :  { %v1908_v24 = vpop.permute.xlu2 %206 }
 0x205   :  { %v268_v25 = vmul.f32 %v1908_v24, %v1908_v24  ;;  %222 = vrot.lane.b32.xlu2 %v1908_v24, %s1815_s0 }
 0x207   :  { %284 = vrot.lane.b32.xlu0 %v268_v25, %s1815_s0  ;;  %v354_v25 = vmul.f32 %v1685_v16, %v353_v21 }
 0x209   :  { %v355_v30 = vmul.f32 0.5, %v354_v25 }
 0x224   :  { %v1915_v28 = vpop.permute.xlu0 %208 }
 0x225   :  { %224 = vrot.lane.b32.xlu1 %v1915_v28, %s1815_s0  ;;  %v269_v33 = vmul.f32 %v1915_v28, %v1915_v28 }
 0x22e   :  { %243 = vadd.xlane.f32.xlu2 %v242_v29 }
 0x231   :  { %304 = vadd.xlane.f32.xlu0 %v303_v31  ;;  %v347_v31 = vmul.f32 %v1683_v7, %v346_v27 }
 0x245   :  { %286 = vrot.lane.b32.xlu0 %v269_v33, %s1815_s0 }
 0x246   :  { %421 = vrot.lane.b32.xlu2 %v1673_v36, %s1815_s0  ;;  %v356_v36 = vsub.f32 1.5, %v355_v30 }
 0x248   :  { %v357_v42 = vmul.f32 %v1685_v16, %v356_v36 }
 0x24a   :  { %v361_v49 = vsel %vm360_vm13, %v1685_v16, %v357_v42 }
 0x24f   :  { %301 = vadd.xlane.f32.xlu1 %v300_v35 }
 0x25f   :  { %v223_v38 = vpop.permute.xlu2 %222 }
 0x260   :  { %v245_v39 = vsel %vm232_vm3, %v223_v38, 0.0 }
 0x268   :  { %410 = vrot.lane.b32.xlu1 %v1672_v37, %s1815_s0 }
 0x26f   :  { %246 = vadd.xlane.f32.xlu0 %v245_v39 }
 0x279   :  { %v285_v40 = vpop.permute.xlu0 %284 }
 0x27a   :  { %v306_v41 = vsel %vm232_vm3, %v285_v40, 0.0  ;;  %v351_v40 = vsel %vm350_vm9, %v1683_v7, %v347_v31 }
 0x27b   :  { %307 = vadd.xlane.f32.xlu0 %v306_v41  ;;  %v330_v41 = vsub.f32 %v1854_v32, %v258_v52  ;;  %v331_v32 = vsub.f32 %v1863_v34, %v1935_v57  ;;  %v332_v52 = vsub.f32 %v1876_v53, %v260_v9 }
 0x27d   :  { %v402_v44 = vmul.f32 %v351_v40, %v330_v41  ;;  %v403_v59 = vmul.f32 %v361_v49, %v331_v32 }
 0x297   :  { %v225_v45 = vpop.permute.xlu1 %224 }
 0x298   :  { %v248_v47 = vsel %vm232_vm3, %v225_v45, 0.0 }
 0x299   :  { %249 = vadd.xlane.f32.xlu0 %v248_v47 }
 0x2a1   :  { %v244_v63 = vpop.xlane.xlu2 %243 }
 0x2a2   :  { %v1941_v2 = vmul.f32 %v1930_v51, %v244_v63 }
 0x2a4   :  { %v305_v58 = vpop.xlane.xlu0 %304  ;;  %v321_v5 = vmul.f32 %v1941_v2, %v1941_v2  ;;  %v333_v63 = vsub.f32 %v1883_v56, %v1941_v2 }
 0x2a5   :  { %v315_v6 = vmul.f32 %v305_v58, %v1930_v51 }
 0x2a7   :  { %v327_v8 = vsub.f32 %v315_v6, %v321_v5 }
 0x2a9   :  { %v339_v14 = vadd.f32 1e-05, %v327_v8  ;;  %v1953_v47 = vpop.permute.xlu2 %421 }
 0x2ab   :  { %1686 = vrsqrt.f32 %v339_v14  ;;  %vm378_vm2 = vweird.f32 %v339_v14 }
 0x2b1   :  { %v1687_v26 = vpop.eup %1686 }
 0x2b2   :  { %v373_v33 = vmul.f32 %v1687_v26, %v339_v14  ;;  %vm379_vm1 = vweird.f32 %v1687_v26 }
 0x2b3   :  { %vm380_vm4 = vmor %vm378_vm2, %vm379_vm1 }
 0x2b4   :  { %v374_v38 = vmul.f32 %v1687_v26, %v373_v33 }
 0x2b6   :  { %v375_v45 = vmul.f32 0.5, %v374_v38 }
 0x2b7   :  { %v287_v1 = vpop.permute.xlu0 %286 }
 0x2b8   :  { %v309_v3 = vsel %vm232_vm3, %v287_v1, 0.0  ;;  %v376_v55 = vsub.f32 1.5, %v375_v45 }
 0x2b9   :  { %310 = vadd.xlane.f32.xlu1 %v309_v3 }
 0x2ba   :  { %v377_v62 = vmul.f32 %v1687_v26, %v376_v55 }
 0x2bc   :  { %v381_v57 = vsel %vm380_vm4, %v1687_v26, %v377_v62 }
 0x2bd   :  { %v405_v1 = vmul.f32 %v381_v57, %v333_v63 }
 0x2c2   :  { %v302_v11 = vpop.xlane.xlu1 %301 }
 0x2c3   :  { %v314_v13 = vmul.f32 %v302_v11, %v1930_v51 }
 0x2c5   :  { %v326_v17 = vsub.f32 %v314_v13, %v320_v12 }
 0x2c7   :  { %v338_v20 = vadd.f32 1e-05, %v326_v17 }
 0x2c9   :  { %1688 = vrsqrt.f32 %v338_v20  ;;  %vm368_vm14 = vweird.f32 %v338_v20 }
 0x2cf   :  { %v1689_v29 = vpop.eup %1688 }
 0x2d0   :  { %v363_v23 = vmul.f32 %v1689_v29, %v338_v20  ;;  %vm369_vm12 = vweird.f32 %v1689_v29 }
 0x2d1   :  { %vm370_vm15 = vmor %vm368_vm14, %vm369_vm12 }
 0x2d2   :  { %v364_v35 = vmul.f32 %v1689_v29, %v363_v23 }
 0x2d4   :  { %v365_v37 = vmul.f32 0.5, %v364_v35 }
 0x2d6   :  { %v366_v39 = vsub.f32 1.5, %v365_v37 }
 0x2d8   :  { %v367_v43 = vmul.f32 %v1689_v29, %v366_v39 }
 0x2da   :  { %v1951_v46 = vpop.permute.xlu1 %410  ;;  %v371_v50 = vsel %vm370_vm15, %v1689_v29, %v367_v43 }
 0x2db   :  { %v413_v48 = vmul.f32 %v1951_v46, %v402_v44  ;;  %v404_v60 = vmul.f32 %v371_v50, %v332_v52  ;;  %v414_v61 = vmul.f32 %v1951_v46, %v403_v59  ;;  %v416_v3 = vmul.f32 %v1951_v46, %v405_v1 }
 0x2dd   :  { %v1960_v54 = vadd.f32 %v1953_v47, %v413_v48  ;;  %v415_v34 = vmul.f32 %v1951_v46, %v404_v60  ;;  %v1970_v53 = vadd.f32 %v1953_v47, %v414_v61  ;;  %v1986_v5 = vadd.f32 %v1953_v47, %v416_v3 }
 0x2df   :  { %438 = vrot.lane.b32.xlu2 %v1960_v54, %s1815_s0  ;;  %v480_v58 = vmul.f32 %v1960_v54, %v1960_v54  ;;  %v1977_v0 = vadd.f32 %v1953_v47, %v415_v34  ;;  %v481_v4 = vmul.f32 %v1970_v53, %v1970_v53  ;;  %v483_v2 = vmul.f32 %v1986_v5, %v1986_v5 }
 0x2e1   :  { %492 = vrot.lane.b32.xlu0 %v480_v58, %s1815_s0  ;;  %v482_v56 = vmul.f32 %v1977_v0, %v1977_v0 }
 0x2e2   :  { %v247_v6 = vpop.xlane.xlu0 %246 }
 0x2e3   :  { %v262_v8 = vmul.f32 %v1930_v51, %v247_v6 }
 0x2e5   :  { %v322_v10 = vmul.f32 %v262_v8, %v262_v8  ;;  %v334_v41 = vsub.f32 %v1908_v24, %v262_v8 }
 0x2e7   :  { %440 = vrot.lane.b32.xlu2 %v1970_v53, %s1815_s0 }
 0x2e9   :  { %442 = vrot.lane.b32.xlu0 %v1977_v0, %s1815_s0 }
 0x2ee   :  { %v308_v7 = vpop.xlane.xlu0 %307 }
 0x2ef   :  { %494 = vrot.lane.b32.xlu2 %v481_v4, %s1815_s0  ;;  %v316_v9 = vmul.f32 %v308_v7, %v1930_v51  ;;  %v1674_v4 = vld [vmem:[#allocation5 + $0x2a8] ss:$0 sm:$0xff] }
 0x2f1   :  { %444 = vrot.lane.b32.xlu0 %v1986_v5, %s1815_s0  ;;  %v328_v11 = vsub.f32 %v316_v9, %v322_v10 }
 0x2f3   :  { %v340_v12 = vadd.f32 1e-05, %v328_v11 }
 0x2f5   :  { %1690 = vrsqrt.f32 %v340_v12  ;;  %vm388_vm6 = vweird.f32 %v340_v12 }
 0x2f7   :  { %496 = vrot.lane.b32.xlu2 %v482_v56, %s1815_s0  ;;  %v1675_v56 = vld [vmem:[#allocation5 + $0x2a0] ss:$0 sm:$0xff] }
 0x2fb   :  { %v1691_v19 = vpop.eup %1690 }
 0x2fc   :  { %v383_v25 = vmul.f32 %v1691_v19, %v340_v12  ;;  %vm389_vm5 = vweird.f32 %v1691_v19 }
 0x2fd   :  { %vm390_vm7 = vmor %vm388_vm6, %vm389_vm5 }
 0x2fe   :  { %v384_v27 = vmul.f32 %v1691_v19, %v383_v25 }
 0x2ff   :  { %498 = vrot.lane.b32.xlu2 %v483_v2, %s1815_s0 }
 0x300   :  { %v385_v31 = vmul.f32 0.5, %v384_v27 }
 0x302   :  { %v386_v33 = vsub.f32 1.5, %v385_v31 }
 0x304   :  { %v387_v38 = vmul.f32 %v1691_v19, %v386_v33 }
 0x306   :  { %v391_v40 = vsel %vm390_vm7, %v1691_v19, %v387_v38 }
 0x307   :  { %v406_v43 = vmul.f32 %v391_v40, %v334_v41 }
 0x309   :  { %v417_v49 = vmul.f32 %v1951_v46, %v406_v43 }
 0x30b   :  { %v2007_v32 = vadd.f32 %v1953_v47, %v417_v49 }
 0x30c   :  { %v250_v13 = vpop.xlane.xlu0 %249 }
 0x30d   :  { %v263_v16 = vmul.f32 %v1930_v51, %v250_v13  ;;  %v484_v34 = vmul.f32 %v2007_v32, %v2007_v32 }
 0x30f   :  { %v323_v20 = vmul.f32 %v263_v16, %v263_v16  ;;  %v335_v59 = vsub.f32 %v1915_v28, %v263_v16 }
 0x32c   :  { %v311_v14 = vpop.xlane.xlu1 %310 }
 0x32d   :  { %v317_v17 = vmul.f32 %v311_v14, %v1930_v51 }
 0x32f   :  { %v329_v26 = vsub.f32 %v317_v17, %v323_v20 }
 0x331   :  { %v341_v29 = vadd.f32 1e-05, %v329_v26 }
 0x333   :  { %1692 = vrsqrt.f32 %v341_v29  ;;  %vm398_vm9 = vweird.f32 %v341_v29 }
 0x339   :  { %v439_v21 = vpop.permute.xlu2 %438  ;;  %v1693_v35 = vpop.eup %1692 }
 0x33a   :  { %v456_v22 = vsel %vm232_vm3, %v439_v21, 0.0  ;;  %v393_v39 = vmul.f32 %v1693_v35, %v341_v29  ;;  %vm399_vm8 = vweird.f32 %v1693_v35 }
 0x33b   :  { %457 = vadd.xlane.f32.xlu0 %v456_v22  ;;  %vm400_vm10 = vmor %vm398_vm9, %vm399_vm8 }
 0x33c   :  { %v394_v42 = vmul.f32 %v1693_v35, %v393_v39 }
 0x33e   :  { %v395_v45 = vmul.f32 0.5, %v394_v42 }
 0x340   :  { %v396_v50 = vsub.f32 1.5, %v395_v45 }
 0x341   :  { %v441_v30 = vpop.permute.xlu2 %440 }
 0x342   :  { %v459_v23 = vsel %vm232_vm3, %v441_v30, 0.0  ;;  %v397_v55 = vmul.f32 %v1693_v35, %v396_v50 }
 0x343   :  { %460 = vadd.xlane.f32.xlu1 %v459_v23 }
 0x344   :  { %v401_v58 = vsel %vm400_vm10, %v1693_v35, %v397_v55 }
 0x345   :  { %v407_v60 = vmul.f32 %v401_v58, %v335_v59 }
 0x347   :  { %v418_v61 = vmul.f32 %v1951_v46, %v407_v60 }
 0x349   :  { %v495_v36 = vpop.permute.xlu2 %494  ;;  %v2015_v62 = vadd.f32 %v1953_v47, %v418_v61 }
 0x34a   :  { %v513_v37 = vsel %vm232_vm3, %v495_v36, 0.0 }
 0x34b   :  { %514 = vadd.xlane.f32.xlu0 %v513_v37  ;;  %v485_v57 = vmul.f32 %v2015_v62, %v2015_v62 }
 0x351   :  { %v497_v28 = vpop.permute.xlu2 %496 }
 0x352   :  { %v516_v3 = vsel %vm232_vm3, %v497_v28, 0.0 }
 0x353   :  { %v493_v44 = vpop.permute.xlu0 %492 }
 0x354   :  { %v510_v48 = vsel %vm232_vm3, %v493_v44, 0.0 }
 0x355   :  { %511 = vadd.xlane.f32.xlu2 %v510_v48 }
 0x359   :  { %v499_v63 = vpop.permute.xlu2 %498 }
 0x35a   :  { %v519_v46 = vsel %vm232_vm3, %v499_v63, 0.0 }
 0x35b   :  { %v443_v52 = vpop.permute.xlu0 %442 }
 0x35c   :  { %446 = vrot.lane.b32.xlu1 %v2007_v32, %s1815_s0  ;;  %v462_v24 = vsel %vm232_vm3, %v443_v52, 0.0 }
 0x35d   :  { %463 = vadd.xlane.f32.xlu0 %v462_v24 }
 0x363   :  { %v445_v47 = vpop.permute.xlu0 %444 }
 0x364   :  { %v465_v1 = vsel %vm232_vm3, %v445_v47, 0.0 }
 0x36d   :  { %448 = vrot.lane.b32.xlu2 %v2015_v62, %s1815_s0 }
 0x371   :  { %500 = vrot.lane.b32.xlu0 %v484_v34, %s1815_s0 }
 0x375   :  { %502 = vrot.lane.b32.xlu2 %v485_v57, %s1815_s0 }
 0x386   :  { %520 = vadd.xlane.f32.xlu1 %v519_v46 }
 0x39b   :  { %466 = vadd.xlane.f32.xlu0 %v465_v1 }
 0x39e   :  { %517 = vadd.xlane.f32.xlu2 %v516_v3 }
 0x3ae   :  { %v458_v7 = vpop.xlane.xlu0 %457 }
 0x3af   :  { %637 = vrot.lane.b32.xlu0 %v1674_v4, %s1815_s0  ;;  %v474_v21 = vmul.f32 %v458_v7, %v1930_v51 }
 0x3b1   :  { %v534_v27 = vmul.f32 %v474_v21, %v474_v21  ;;  %v546_v47 = vsub.f32 %v1960_v54, %v474_v21 }
 0x3b6   :  { %626 = vrot.lane.b32.xlu2 %v1675_v56, %s1815_s0  ;;  %v461_v2 = vpop.xlane.xlu1 %460 }
 0x3b7   :  { %v475_v20 = vmul.f32 %v461_v2, %v1930_v51 }
 0x3b9   :  { %v535_v26 = vmul.f32 %v475_v20, %v475_v20  ;;  %v547_v1 = vsub.f32 %v1970_v53, %v475_v20 }
 0x3be   :  { %v515_v11 = vpop.xlane.xlu0 %514 }
 0x3bf   :  { %v529_v22 = vmul.f32 %v515_v11, %v1930_v51 }
 0x3c1   :  { %v541_v29 = vsub.f32 %v529_v22, %v535_v26 }
 0x3c3   :  { %v553_v23 = vadd.f32 1e-05, %v541_v29 }
 0x3c5   :  { %1694 = vrsqrt.f32 %v553_v23  ;;  %vm574_vm13 = vweird.f32 %v553_v23 }
 0x3c8   :  { %v512_v6 = vpop.xlane.xlu2 %511 }
 0x3c9   :  { %v528_v25 = vmul.f32 %v512_v6, %v1930_v51 }
 0x3cb   :  { %v540_v30 = vsub.f32 %v528_v25, %v534_v27  ;;  %v1695_v33 = vpop.eup %1694 }
 0x3cc   :  { %v569_v36 = vmul.f32 %v1695_v33, %v553_v23  ;;  %vm575_vm11 = vweird.f32 %v1695_v33 }
 0x3cd   :  { %v552_v31 = vadd.f32 1e-05, %v540_v30  ;;  %vm576_vm14 = vmor %vm574_vm13, %vm575_vm11 }
 0x3ce   :  { %v447_v8 = vpop.permute.xlu1 %446  ;;  %v570_v38 = vmul.f32 %v1695_v33, %v569_v36 }
 0x3cf   :  { %v468_v9 = vsel %vm232_vm3, %v447_v8, 0.0  ;;  %1696 = vrsqrt.f32 %v552_v31  ;;  %vm564_vm15 = vweird.f32 %v552_v31 }
 0x3d0   :  { %469 = vadd.xlane.f32.xlu1 %v468_v9  ;;  %v449_v10 = vpop.permute.xlu2 %448  ;;  %v464_v12 = vpop.xlane.xlu0 %463  ;;  %v571_v43 = vmul.f32 0.5, %v570_v38 }
 0x3d1   :  { %v471_v19 = vsel %vm232_vm3, %v449_v10, 0.0  ;;  %v476_v40 = vmul.f32 %v464_v12, %v1930_v51 }
 0x3d2   :  { %v572_v24 = vsub.f32 1.5, %v571_v43 }
 0x3d3   :  { %v536_v52 = vmul.f32 %v476_v40, %v476_v40  ;;  %v548_v22 = vsub.f32 %v1977_v0, %v476_v40 }
 0x3d4   :  { %v573_v57 = vmul.f32 %v1695_v33, %v572_v24  ;;  %v646_v24 = vld [vmem:[#allocation5 + $0x100] sm:$0xff] }
 0x3d5   :  { %v1697_v35 = vpop.eup %1696 }
 0x3d6   :  { %v559_v37 = vmul.f32 %v1697_v35, %v552_v31  ;;  %vm565_vm12 = vweird.f32 %v1697_v35  ;;  %v577_v63 = vsel %vm576_vm14, %v1695_v33, %v573_v57 }
 0x3d7   :  { %vm566_vm1 = vmor %vm564_vm15, %vm565_vm12  ;;  %v619_v6 = vmul.f32 %v577_v63, %v547_v1  ;;  %vm809_vm15 = vcmask 785408  }
 0x3d8   :  { %v503_v13 = vpop.permute.xlu2 %502  ;;  %v560_v39 = vmul.f32 %v1697_v35, %v559_v37 }
 0x3d9   :  { %v525_v14 = vsel %vm232_vm3, %v503_v13, 0.0 }
 0x3da   :  { %v561_v44 = vmul.f32 0.5, %v560_v39 }
 0x3dc   :  { %v562_v58 = vsub.f32 1.5, %v561_v44  ;;  %v649_v44 = vld [vmem:[#allocation5 + $0x118] sm:$0xff] }
 0x3dd   :  { %694 = vmatpush.msra.mxu3 %v649_v44 }
 0x3de   :  { %v563_v28 = vmul.f32 %v1697_v35, %v562_v58 }
 0x3df   :  { %526 = vadd.xlane.f32.xlu2 %v525_v14 }
 0x3e0   :  { %v567_v46 = vsel %vm566_vm1, %v1697_v35, %v563_v28  ;;  %vm959_vm1 = vcmask 31744  }
 0x3e1   :  { %v618_v7 = vmul.f32 %v567_v46, %v546_v47 }
 0x3e3   :  { %v501_v16 = vpop.permute.xlu0 %500 }
 0x3e4   :  { %v522_v17 = vsel %vm232_vm3, %v501_v16, 0.0 }
 0x3e5   :  { %523 = vadd.xlane.f32.xlu1 %v522_v17 }
 0x3ed   :  { %472 = vadd.xlane.f32.xlu1 %v471_v19 }
 0x3f9   :  { %v521_v41 = vpop.xlane.xlu1 %520 }
 0x3fa   :  { %v531_v48 = vmul.f32 %v521_v41, %v1930_v51 }
 0x40e   :  { %v467_v42 = vpop.xlane.xlu0 %466 }
 0x40f   :  { %v477_v45 = vmul.f32 %v467_v42, %v1930_v51 }
 0x411   :  { %v537_v49 = vmul.f32 %v477_v45, %v477_v45  ;;  %v518_v50 = vpop.xlane.xlu2 %517  ;;  %v549_v29 = vsub.f32 %v1986_v5, %v477_v45  ;;  %v648_v45 = vld [vmem:[#allocation5 + $0x110] sm:$0xff] }
 0x412   :  { %v530_v55 = vmul.f32 %v518_v50, %v1930_v51  ;;  %v647_v50 = vld [vmem:[#allocation5 + $0x108] sm:$0xff]  ;;  %695 = vmatpush.msra.mxu3 %v648_v45 }
 0x413   :  { %v543_v59 = vsub.f32 %v531_v48, %v537_v49 }
 0x414   :  { %v542_v60 = vsub.f32 %v530_v55, %v536_v52  ;;  %696 = vmatpush.msra.mxu3 %v647_v50 }
 0x415   :  { %v555_v61 = vadd.f32 1e-05, %v543_v59 }
 0x416   :  { %v554_v34 = vadd.f32 1e-05, %v542_v60  ;;  %697 = vmatpush.msra.mxu3 %v646_v24 }
 0x417   :  { %1698 = vrsqrt.f32 %v555_v61  ;;  %vm594_vm7 = vweird.f32 %v555_v61 }
 0x418   :  { %1700 = vrsqrt.f32 %v554_v34  ;;  %vm584_vm5 = vweird.f32 %v554_v34 }
 0x419   :  { %v2044_v4 = vpop.permute.xlu2 %626 }
 0x41a   :  { %v630_v10 = vmul.f32 %v2044_v4, %v619_v6  ;;  %v629_v11 = vmul.f32 %v2044_v4, %v618_v7 }
 0x41d   :  { %v1699_v3 = vpop.eup %1698 }
 0x41e   :  { %v1701_v56 = vpop.eup %1700  ;;  %v589_v2 = vmul.f32 %v1699_v3, %v555_v61  ;;  %vm595_vm4 = vweird.f32 %v1699_v3 }
 0x41f   :  { %v579_v8 = vmul.f32 %v1701_v56, %v554_v34  ;;  %vm585_vm2 = vweird.f32 %v1701_v56  ;;  %vm596_vm8 = vmor %vm594_vm7, %vm595_vm4  ;;  %vm1210_vm4 = vcmask 1043456  }
 0x420   :  { %v590_v9 = vmul.f32 %v1699_v3, %v589_v2  ;;  %vm586_vm6 = vmor %vm584_vm5, %vm585_vm2  ;;  %vm966_vm2 = vcmask 64512  }
 0x421   :  { %v580_v12 = vmul.f32 %v1701_v56, %v579_v8  ;;  %v2048_v13 = vpop.permute.xlu0 %637 }
 0x422   :  { %v591_v14 = vmul.f32 0.5, %v590_v9  ;;  %v641_v54 = vadd.f32 %v2048_v13, %v630_v10  ;;  %v640_v53 = vadd.f32 %v2048_v13, %v629_v11 }
 0x423   :  { %v581_v16 = vmul.f32 0.5, %v580_v12 }
 0x424   :  { %v592_v17 = vsub.f32 1.5, %v591_v14  ;;  %660 = vrot.lane.b32.xlu1 %v641_v54, %s1815_s0  ;;  %658 = vrot.lane.b32.xlu0 %v640_v53, %s1815_s0 }
 0x425   :  { %v582_v19 = vsub.f32 1.5, %v581_v16 }
 0x426   :  { %v593_v20 = vmul.f32 %v1699_v3, %v592_v17 }
 0x427   :  { %v583_v21 = vmul.f32 %v1701_v56, %v582_v19 }
 0x428   :  { %v597_v27 = vsel %vm596_vm8, %v1699_v3, %v593_v20 }
 0x429   :  { %v587_v25 = vsel %vm586_vm6, %v1701_v56, %v583_v21  ;;  %v621_v23 = vmul.f32 %v597_v27, %v549_v29 }
 0x42a   :  { %v620_v26 = vmul.f32 %v587_v25, %v548_v22 }
 0x42b   :  { %v632_v33 = vmul.f32 %v2044_v4, %v621_v23 }
 0x42c   :  { %v631_v30 = vmul.f32 %v2044_v4, %v620_v26 }
 0x42d   :  { %v643_v35 = vadd.f32 %v2048_v13, %v632_v33  ;;  %v807_v33 = vld [vmem:[#allocation5 + $0x190] sm:$0xff] }
 0x42e   :  { %v642_v31 = vadd.f32 %v2048_v13, %v631_v30 }
 0x430   :  { %662 = vrot.lane.b32.xlu0 %v642_v31, %s1815_s0  ;;  %v808_v31 = vld [vmem:[#allocation5 + $0x198] sm:$0xff] }
 0x431   :  { %832 = vmatpush.msrb.mxu0 %v808_v31 }
 0x433   :  { %833 = vmatpush.msrb.mxu0 %v807_v33 }
 0x438   :  { %664 = vrot.lane.b32.xlu0 %v643_v35, %s1815_s0  ;;  %v806_v35 = vld [vmem:[#allocation5 + $0x188] sm:$0xff] }
 0x439   :  { %834 = vmatpush.msrb.mxu0 %v806_v35 }
 0x443   :  { %v470_v0 = vpop.xlane.xlu1 %469 }
 0x444   :  { %v478_v36 = vmul.f32 %v470_v0, %v1930_v51  ;;  %v805_v0 = vld [vmem:[#allocation5 + $0x180] sm:$0xff] }
 0x445   :  { %835 = vmatpush.msrb.mxu0 %v805_v0 }
 0x446   :  { %v538_v38 = vmul.f32 %v478_v36, %v478_v36 }
 0x452   :  { %v527_v41 = vpop.xlane.xlu2 %526 }
 0x453   :  { %v533_v48 = vmul.f32 %v527_v41, %v1930_v51  ;;  %v798_v41 = vld [vmem:[#allocation5 + $0x148] sm:$0xff] }
 0x458   :  { %v524_v37 = vpop.xlane.xlu1 %523 }
 0x459   :  { %v532_v5 = vmul.f32 %v524_v37, %v1930_v51  ;;  %v803_v37 = vld [vmem:[#allocation5 + $0x170] sm:$0xff] }
 0x45b   :  { %v544_v39 = vsub.f32 %v532_v5, %v538_v38  ;;  %v802_v38 = vld [vmem:[#allocation5 + $0x168] sm:$0xff]  ;;  %v801_v5 = vld [vmem:[#allocation5 + $0x160] sm:$0xff] }
 0x45d   :  { %v556_v40 = vadd.f32 1e-05, %v544_v39  ;;  %v800_v39 = vld [vmem:[#allocation5 + $0x158] sm:$0xff] }
 0x45f   :  { %1702 = vrsqrt.f32 %v556_v40  ;;  %vm604_vm10 = vweird.f32 %v556_v40 }
 0x460   :  { %v473_v42 = vpop.xlane.xlu1 %472 }
 0x461   :  { %v479_v43 = vmul.f32 %v473_v42, %v1930_v51  ;;  %v550_v51 = vsub.f32 %v2007_v32, %v478_v36  ;;  %v804_v36 = vld [vmem:[#allocation5 + $0x178] sm:$0xff]  ;;  %v797_v42 = vld [vmem:[#allocation5 + $0x140] sm:$0xff] }
 0x462   :  { %836 = vmatpush.msrb.mxu0 %v804_v36 }
 0x463   :  { %v539_v49 = vmul.f32 %v479_v43, %v479_v43  ;;  %v551_v8 = vsub.f32 %v2015_v62, %v479_v43 }
 0x464   :  { %837 = vmatpush.msrb.mxu0 %v803_v37 }
 0x465   :  { %v1703_v52 = vpop.eup %1702  ;;  %v545_v55 = vsub.f32 %v533_v48, %v539_v49 }
 0x466   :  { %v599_v58 = vmul.f32 %v1703_v52, %v556_v40  ;;  %vm605_vm9 = vweird.f32 %v1703_v52  ;;  %838 = vmatpush.msrb.mxu0 %v802_v38  ;;  %v799_v40 = vld [vmem:[#allocation5 + $0x150] sm:$0xff] }
 0x467   :  { %v557_v59 = vadd.f32 1e-05, %v545_v55  ;;  %vm606_vm11 = vmor %vm604_vm10, %vm605_vm9  ;;  %vm1191_vm9 = vcmask 97280  }
 0x468   :  { %v600_v60 = vmul.f32 %v1703_v52, %v599_v58  ;;  %839 = vmatpush.msrb.mxu0 %v801_v5 }
 0x469   :  { %1704 = vrsqrt.f32 %v557_v59  ;;  %vm614_vm13 = vweird.f32 %v557_v59 }
 0x46a   :  { %v601_v61 = vmul.f32 0.5, %v600_v60  ;;  %840 = vmatpush.msrb.mxu0 %v800_v39 }
 0x46c   :  { %v602_v34 = vsub.f32 1.5, %v601_v61  ;;  %841 = vmatpush.msrb.mxu0 %v799_v40 }
 0x46e   :  { %v603_v57 = vmul.f32 %v1703_v52, %v602_v34  ;;  %842 = vmatpush.msrb.mxu0 %v798_v41 }
 0x46f   :  { %v1705_v28 = vpop.eup %1704 }
 0x470   :  { %v609_v63 = vmul.f32 %v1705_v28, %v557_v59  ;;  %v607_v46 = vsel %vm606_vm11, %v1703_v52, %v603_v57  ;;  %vm615_vm12 = vweird.f32 %v1705_v28  ;;  %843 = vmatpush.msrb.mxu0 %v797_v42 }
 0x471   :  { %v622_v47 = vmul.f32 %v607_v46, %v550_v51  ;;  %vm616_vm14 = vmor %vm614_vm13, %vm615_vm12 }
 0x472   :  { %v610_v1 = vmul.f32 %v1705_v28, %v609_v63 }
 0x473   :  { %v633_v3 = vmul.f32 %v2044_v4, %v622_v47 }
 0x474   :  { %v611_v56 = vmul.f32 0.5, %v610_v1 }
 0x475   :  { %v644_v2 = vadd.f32 %v2048_v13, %v633_v3 }
 0x476   :  { %v612_v6 = vsub.f32 1.5, %v611_v56 }
 0x477   :  { %666 = vrot.lane.b32.xlu0 %v644_v2, %s1815_s0 }
 0x478   :  { %v613_v7 = vmul.f32 %v1705_v28, %v612_v6 }
 0x47a   :  { %v617_v32 = vsel %vm616_vm14, %v1705_v28, %v613_v7 }
 0x47b   :  { %v623_v9 = vmul.f32 %v617_v32, %v551_v8 }
 0x47d   :  { %v634_v10 = vmul.f32 %v2044_v4, %v623_v9 }
 0x47f   :  { %v645_v11 = vadd.f32 %v2048_v13, %v634_v10  ;;  %v1676_v13 = vld [vmem:[#allocation5 + $0x2b0] ss:$0 sm:$0xff] }
 0x481   :  { %668 = vrot.lane.b32.xlu1 %v645_v11, %s1815_s0 }
 0x496   :  { %v659_v12 = vpop.permute.xlu0 %658  ;;  %v661_v14 = vpop.permute.xlu1 %660 }
 0x497   :  { %1615 = vmatmul.msk.f32.vlgmr.msra.gmra.mxu3 %vm232_vm3, %v659_v12 }
 0x49f   :  { %1616 = vmatmul.msk.f32.gmra.mxu3 %vm232_vm3, %v661_v14 }
 0x4a2   :  { %v663_v54 = vpop.permute.xlu0 %662 }
 0x4a7   :  { %1617 = vmatmul.msk.f32.gmra.mxu3 %vm232_vm3, %v663_v54 }
 0x4aa   :  { %v665_v53 = vpop.permute.xlu0 %664 }
 0x4af   :  { %1618 = vmatmul.msk.f32.gmra.mxu3 %vm232_vm3, %v665_v53 }
 0x4e9   :  { %v667_v62 = vpop.permute.xlu0 %666 }
 0x4ea   :  { %1619 = vmatmul.msk.f32.gmra.mxu3 %vm232_vm3, %v667_v62 }
 0x4f3   :  { %v669_v4 = vpop.permute.xlu1 %668 }
 0x4f4   :  { %1620 = vmatmul.msk.f32.gmra.mxu3 %vm232_vm3, %v669_v4 }
 0x51a   :  { %v699_v16 = vpop.f32.mrf.mxu3 }
 0x51b   :  { %v700_v17 = vadd.f32 %v1676_v13, %v699_v16 }
 0x51d   :  { %755 = vrot.lane.b32.xlu1 %v700_v17, %s1818_s23  ;;  %719 = vrot.lane.b32.xlu0 %v700_v17, %s1816_s1 }
 0x522   :  { %v702_v19 = vpop.f32.mrf.mxu3 }
 0x523   :  { %v703_v20 = vadd.f32 %v1676_v13, %v702_v19 }
 0x525   :  { %721 = vrot.lane.b32.xlu1 %v703_v20, %s1816_s1  ;;  %737 = vrot.lane.b32.xlu0 %v700_v17, %s1815_s0 }
 0x52a   :  { %v705_v21 = vpop.f32.mrf.mxu3 }
 0x52b   :  { %v2094_v29 = vadd.f32 %v1676_v13, %v705_v21 }
 0x52d   :  { %757 = vrot.lane.b32.xlu0 %v703_v20, %s1818_s23 }
 0x532   :  { %v708_v22 = vpop.f32.mrf.mxu3 }
 0x533   :  { %v2086_v25 = vadd.f32 %v1676_v13, %v708_v22 }
 0x535   :  { %739 = vrot.lane.b32.xlu0 %v703_v20, %s1815_s0 }
 0x53d   :  { %761 = vrot.lane.b32.xlu0 %v2086_v25, %s1818_s23 }
 0x56d   :  { %v711_v26 = vpop.f32.mrf.mxu3 }
 0x56e   :  { %v2090_v27 = vadd.f32 %v1676_v13, %v711_v26 }
 0x570   :  { %727 = vrot.lane.b32.xlu2 %v2090_v27, %s1818_s23 }
 0x577   :  { %v714_v30 = vpop.f32.mrf.mxu3 }
 0x578   :  { %v2096_v23 = vadd.f32 %v1676_v13, %v714_v30  ;;  %767 = vrot.lane.b32.xlu2 %v2094_v29, %s1815_s0 }
 0x57a   :  { %773 = vrot.lane.b32.xlu0 %v2096_v23, %s1815_s0  ;;  %729 = vrot.lane.b32.xlu1 %v2096_v23, %s1818_s23 }
 0x580   :  { %771 = vrot.lane.b32.xlu2 %v2090_v27, %s1815_s0 }
 0x582   :  { %759 = vrot.lane.b32.xlu1 %v2094_v29, %s1818_s23 }
 0x58a   :  { %769 = vrot.lane.b32.xlu1 %v2086_v25, %s1815_s0 }
 0x58f   :  { %v720_v43 = vpop.permute.xlu0 %719  ;;  %v756_v44 = vpop.permute.xlu1 %755 }
 0x590   :  { %v779_v48 = vsel %vm232_vm3, %v700_v17, %v756_v44  ;;  %v733_v49 = vsel %vm232_vm3, %v720_v43, %v2094_v29 }
 0x597   :  { %v2110_v45 = vpop.permute.xlu0 %737  ;;  %v722_v59 = vpop.permute.xlu1 %721 }
 0x598   :  { %v785_v52 = vsel %vm58_vm0, %v779_v48, %v2110_v45  ;;  %v734_v61 = vsel %vm232_vm3, %v722_v59, %v2086_v25 }
 0x59f   :  { %v758_v58 = vpop.permute.xlu0 %757 }
 0x5a0   :  { %v780_v34 = vsel %vm232_vm3, %v703_v20, %v758_v58 }
 0x5a7   :  { %v2119_v60 = vpop.permute.xlu0 %739 }
 0x5a8   :  { %v786_v28 = vsel %vm58_vm0, %v780_v34, %v2119_v60 }
 0x5af   :  { %v762_v2 = vpop.permute.xlu0 %761 }
 0x5b0   :  { %v782_v6 = vsel %vm232_vm3, %v2086_v25, %v762_v2 }
 0x5ca   :  { %v728_v50 = vpop.permute.xlu2 %727 }
 0x5cb   :  { %v735_v55 = vsel %vm58_vm0, %v733_v49, %v728_v50  ;;  %v783_v10 = vsel %vm232_vm3, %v2090_v27, %v728_v50 }
 0x5cc   :  { %v791_v24 = vmul.f32 %v785_v52, %v735_v55 }
 0x5ce   :  { %1621 = vmatmul.msk.f32.vlgmr.msrb.gmra.mxu0 %vm809_vm15, %v791_v24 }
 0x5d2   :  { %v768_v47 = vpop.permute.xlu2 %767 }
 0x5da   :  { %v772_v9 = vpop.permute.xlu2 %771 }
 0x5db   :  { %v789_v11 = vsel %vm58_vm0, %v783_v10, %v772_v9 }
 0x5dc   :  { %v795_v12 = vmul.f32 %v789_v11, %v735_v55 }
 0x5ec   :  { %v730_v57 = vpop.permute.xlu1 %729  ;;  %v774_v54 = vpop.permute.xlu0 %773 }
 0x5ed   :  { %v736_v51 = vsel %vm58_vm0, %v734_v61, %v730_v57  ;;  %v784_v14 = vsel %vm232_vm3, %v2096_v23, %v730_v57 }
 0x5ee   :  { %v792_v63 = vmul.f32 %v786_v28, %v736_v51  ;;  %v790_v53 = vsel %vm58_vm0, %v784_v14, %v774_v54 }
 0x5ef   :  { %v796_v62 = vmul.f32 %v790_v53, %v736_v51 }
 0x5f0   :  { %1622 = vmatmul.msk.f32.gmra.mxu0 %vm809_vm15, %v792_v63 }
 0x5f4   :  { %v760_v46 = vpop.permute.xlu1 %759 }
 0x5f5   :  { %v781_v1 = vsel %vm232_vm3, %v2094_v29, %v760_v46 }
 0x5f6   :  { %v787_v3 = vsel %vm58_vm0, %v781_v1, %v768_v47 }
 0x5f7   :  { %v793_v56 = vmul.f32 %v787_v3, %v735_v55 }
 0x5f9   :  { %1623 = vmatmul.msk.f32.gmra.mxu0 %vm809_vm15, %v793_v56 }
 0x5fc   :  { %v770_v7 = vpop.permute.xlu1 %769 }
 0x5fd   :  { %v788_v8 = vsel %vm58_vm0, %v782_v6, %v770_v7 }
 0x5fe   :  { %v794_v32 = vmul.f32 %v788_v8, %v736_v51 }
 0x601   :  { %1624 = vmatmul.msk.f32.gmra.mxu0 %vm809_vm15, %v794_v32 }
 0x609   :  { %1625 = vmatmul.msk.f32.gmra.mxu0 %vm809_vm15, %v795_v12 }
 0x611   :  { %1626 = vmatmul.msk.f32.gmra.mxu0 %vm809_vm15, %v796_v62 }
 0x64b   :  { %v2144_v4 = vpop.f32.mrf.mxu0 }
 0x64c   :  { %893 = vrot.lane.b32.xlu2 %v2144_v4, %s1819_s24  ;;  %869 = vrot.lane.b32.xlu1 %v2144_v4, %s1820_s25 }
 0x66d   :  { %v2150_v13 = vpop.f32.mrf.mxu0 }
 0x66e   :  { %895 = vrot.lane.b32.xlu1 %v2150_v13, %s1819_s24  ;;  %871 = vrot.lane.b32.xlu0 %v2150_v13, %s1820_s25 }
 0x676   :  { %v2156_v16 = vpop.f32.mrf.mxu0 }
 0x677   :  { %897 = vrot.lane.b32.xlu0 %v2156_v16, %s1819_s24  ;;  %873 = vrot.lane.b32.xlu2 %v2156_v16, %s1820_s25 }
 0x67e   :  { %v2162_v17 = vpop.f32.mrf.mxu0 }
 0x67f   :  { %899 = vrot.lane.b32.xlu2 %v2162_v17, %s1819_s24  ;;  %875 = vrot.lane.b32.xlu1 %v2162_v17, %s1820_s25 }
 0x686   :  { %v2168_v19 = vpop.f32.mrf.mxu0 }
 0x687   :  { %901 = vrot.lane.b32.xlu1 %v2168_v19, %s1819_s24  ;;  %877 = vrot.lane.b32.xlu0 %v2168_v19, %s1820_s25 }
 0x68e   :  { %v2174_v20 = vpop.f32.mrf.mxu0 }
 0x68f   :  { %903 = vrot.lane.b32.xlu0 %v2174_v20, %s1819_s24  ;;  %879 = vrot.lane.b32.xlu2 %v2174_v20, %s1820_s25 }
 0x6a6   :  { %v894_v26 = vpop.permute.xlu2 %893 }
 0x6be   :  { %v870_v21 = vpop.permute.xlu1 %869 }
 0x6bf   :  { %v887_v22 = vmax.f32 %v2144_v4, %v870_v21 }
 0x6c1   :  { %v911_v30 = vmax.f32 %v887_v22, %v894_v26 }
 0x6c3   :  { %923 = vrot.lane.b32.xlu1 %v911_v30, %s1821_s26  ;;  %941 = vrot.lane.b32.xlu2 %v911_v30, %s1813_s22 }
 0x6d1   :  { %v874_v36 = vpop.permute.xlu2 %873 }
 0x6d2   :  { %v889_v37 = vmax.f32 %v2156_v16, %v874_v36 }
 0x6d9   :  { %v900_v41 = vpop.permute.xlu2 %899 }
 0x6e0   :  { %v872_v31 = vpop.permute.xlu0 %871  ;;  %v896_v35 = vpop.permute.xlu1 %895 }
 0x6e1   :  { %v888_v33 = vmax.f32 %v2150_v13, %v872_v31 }
 0x6e3   :  { %v912_v0 = vmax.f32 %v888_v33, %v896_v35 }
 0x6e5   :  { %943 = vrot.lane.b32.xlu1 %v912_v0, %s1813_s22  ;;  %925 = vrot.lane.b32.xlu0 %v912_v0, %s1821_s26 }
 0x6e9   :  { %v898_v38 = vpop.permute.xlu0 %897  ;;  %v880_v50 = vpop.permute.xlu2 %879 }
 0x6ea   :  { %v913_v5 = vmax.f32 %v889_v37, %v898_v38  ;;  %v892_v52 = vmax.f32 %v2174_v20, %v880_v50 }
 0x6ec   :  { %927 = vrot.lane.b32.xlu2 %v913_v5, %s1821_s26 }
 0x6ed   :  { %945 = vrot.lane.b32.xlu0 %v913_v5, %s1813_s22 }
 0x6f1   :  { %v876_v39 = vpop.permute.xlu1 %875 }
 0x6f2   :  { %v890_v40 = vmax.f32 %v2162_v17, %v876_v39 }
 0x6f4   :  { %v914_v42 = vmax.f32 %v890_v40, %v900_v41 }
 0x6f6   :  { %929 = vrot.lane.b32.xlu1 %v914_v42, %s1821_s26  ;;  %947 = vrot.lane.b32.xlu2 %v914_v42, %s1813_s22 }
 0x6f9   :  { %v878_v43 = vpop.permute.xlu0 %877  ;;  %v902_v48 = vpop.permute.xlu1 %901 }
 0x6fa   :  { %v891_v44 = vmax.f32 %v2168_v19, %v878_v43 }
 0x6fc   :  { %v915_v49 = vmax.f32 %v891_v44, %v902_v48 }
 0x6fe   :  { %949 = vrot.lane.b32.xlu1 %v915_v49, %s1813_s22  ;;  %931 = vrot.lane.b32.xlu0 %v915_v49, %s1821_s26 }
 0x701   :  { %v904_v55 = vpop.permute.xlu0 %903 }
 0x702   :  { %v916_v24 = vmax.f32 %v892_v52, %v904_v55 }
 0x704   :  { %933 = vrot.lane.b32.xlu2 %v916_v24, %s1821_s26 }
 0x706   :  { %951 = vrot.lane.b32.xlu0 %v916_v24, %s1813_s22 }
 0x71d   :  { %v942_v59 = vpop.permute.xlu2 %941 }
 0x735   :  { %v924_v58 = vpop.permute.xlu1 %923 }
 0x736   :  { %v960_v61 = vsel %vm959_vm1, %v911_v30, %v924_v58 }
 0x737   :  { %v967_v34 = vsel %vm966_vm2, %v960_v61, %v942_v59 }
 0x738   :  { %v973_v57 = vsub.f32 %v2144_v4, %v967_v34 }
 0x73a   :  { %v979_v28 = vmul.f32 1.442695, %v973_v57 }
 0x73c   :  { %1706 = vpow2.f32 %v979_v28 }
 0x742   :  { %v2201_v51 = vpop.eup %1706 }
 0x743   :  { %997 = vrot.lane.b32.xlu1 %v2201_v51, %s1820_s25  ;;  %1021 = vrot.lane.b32.xlu2 %v2201_v51, %s1819_s24 }
 0x746   :  { %v928_v56 = vpop.permute.xlu2 %927 }
 0x747   :  { %v962_v6 = vsel %vm959_vm1, %v913_v5, %v928_v56  ;;  %v1189_v56 = vld [vmem:[#allocation5 + $0x1a0] sm:$0xff] }
 0x750   :  { %v948_v12 = vpop.permute.xlu2 %947 }
 0x757   :  { %v944_v63 = vpop.permute.xlu1 %943  ;;  %v926_v46 = vpop.permute.xlu0 %925 }
 0x758   :  { %v961_v47 = vsel %vm959_vm1, %v912_v0, %v926_v46 }
 0x759   :  { %v968_v1 = vsel %vm966_vm2, %v961_v47, %v944_v63 }
 0x75a   :  { %v974_v3 = vsub.f32 %v2150_v13, %v968_v1 }
 0x75c   :  { %v981_v2 = vmul.f32 1.442695, %v974_v3  ;;  %v1190_v3 = vld [vmem:[#allocation5 + $0x1a8] sm:$0xf] }
 0x75d   :  { %1627 = vmatpush.msk.msrb.mxu2 %vm1210_vm4, %v1190_v3 }
 0x75e   :  { %1708 = vpow2.f32 %v981_v2  ;;  %v934_v31 = vpop.permute.xlu2 %933 }
 0x75f   :  { %v946_v7 = vpop.permute.xlu0 %945  ;;  %v965_v33 = vsel %vm959_vm1, %v916_v24, %v934_v31  ;;  %1229 = vmatpush.msrb.mxu2 %v1189_v56 }
 0x760   :  { %v969_v8 = vsel %vm966_vm2, %v962_v6, %v946_v7 }
 0x761   :  { %v975_v32 = vsub.f32 %v2156_v16, %v969_v8 }
 0x763   :  { %v983_v9 = vmul.f32 1.442695, %v975_v32 }
 0x764   :  { %v2213_v10 = vpop.eup %1708 }
 0x765   :  { %1710 = vpow2.f32 %v983_v9  ;;  %1023 = vrot.lane.b32.xlu1 %v2213_v10, %s1819_s24  ;;  %999 = vrot.lane.b32.xlu0 %v2213_v10, %s1820_s25 }
 0x768   :  { %v930_v11 = vpop.permute.xlu1 %929 }
 0x769   :  { %v963_v14 = vsel %vm959_vm1, %v914_v42, %v930_v11 }
 0x76a   :  { %v970_v54 = vsel %vm966_vm2, %v963_v14, %v948_v12 }
 0x76b   :  { %v2221_v53 = vpop.eup %1710  ;;  %v976_v62 = vsub.f32 %v2162_v17, %v970_v54 }
 0x76c   :  { %1001 = vrot.lane.b32.xlu2 %v2221_v53, %s1820_s25 }
 0x76d   :  { %v985_v4 = vmul.f32 1.442695, %v976_v62  ;;  %1025 = vrot.lane.b32.xlu0 %v2221_v53, %s1819_s24 }
 0x76f   :  { %1712 = vpow2.f32 %v985_v4 }
 0x770   :  { %v950_v13 = vpop.permute.xlu1 %949  ;;  %v932_v16 = vpop.permute.xlu0 %931 }
 0x771   :  { %v964_v21 = vsel %vm959_vm1, %v915_v49, %v932_v16 }
 0x772   :  { %v971_v22 = vsel %vm966_vm2, %v964_v21, %v950_v13 }
 0x773   :  { %v977_v26 = vsub.f32 %v2168_v19, %v971_v22 }
 0x775   :  { %v2231_v30 = vpop.eup %1712  ;;  %v987_v17 = vmul.f32 1.442695, %v977_v26 }
 0x776   :  { %1003 = vrot.lane.b32.xlu1 %v2231_v30, %s1820_s25  ;;  %1027 = vrot.lane.b32.xlu2 %v2231_v30, %s1819_s24 }
 0x777   :  { %1714 = vpow2.f32 %v987_v17 }
 0x778   :  { %v952_v35 = vpop.permute.xlu0 %951 }
 0x779   :  { %v972_v0 = vsel %vm966_vm2, %v965_v33, %v952_v35 }
 0x77a   :  { %v978_v36 = vsub.f32 %v2174_v20, %v972_v0 }
 0x77c   :  { %v989_v37 = vmul.f32 1.442695, %v978_v36 }
 0x77d   :  { %v2240_v19 = vpop.eup %1714 }
 0x77e   :  { %1716 = vpow2.f32 %v989_v37  ;;  %1029 = vrot.lane.b32.xlu1 %v2240_v19, %s1819_s24  ;;  %1005 = vrot.lane.b32.xlu0 %v2240_v19, %s1820_s25 }
 0x784   :  { %v2246_v38 = vpop.eup %1716 }
 0x785   :  { %1007 = vrot.lane.b32.xlu2 %v2246_v38, %s1820_s25 }
 0x786   :  { %1031 = vrot.lane.b32.xlu0 %v2246_v38, %s1819_s24 }
 0x79d   :  { %v1022_v39 = vpop.permute.xlu2 %1021 }
 0x7b5   :  { %v998_v5 = vpop.permute.xlu1 %997 }
 0x7b6   :  { %v1015_v20 = vadd.f32 %v2201_v51, %v998_v5 }
 0x7b8   :  { %v1039_v40 = vadd.f32 %v1022_v39, %v1015_v20 }
 0x7ba   :  { %1051 = vrot.lane.b32.xlu1 %v1039_v40, %s1821_s26  ;;  %1069 = vrot.lane.b32.xlu2 %v1039_v40, %s1813_s22 }
 0x7c6   :  { %v1002_v48 = vpop.permute.xlu2 %1001 }
 0x7c7   :  { %v1017_v49 = vadd.f32 %v2221_v53, %v1002_v48 }
 0x7d0   :  { %v1028_v58 = vpop.permute.xlu2 %1027 }
 0x7d7   :  { %v1000_v41 = vpop.permute.xlu0 %999  ;;  %v1024_v43 = vpop.permute.xlu1 %1023 }
 0x7d8   :  { %v1016_v42 = vadd.f32 %v2213_v10, %v1000_v41 }
 0x7da   :  { %v1040_v44 = vadd.f32 %v1024_v43, %v1016_v42 }
 0x7dc   :  { %1071 = vrot.lane.b32.xlu1 %v1040_v44, %s1813_s22  ;;  %1053 = vrot.lane.b32.xlu0 %v1040_v44, %s1821_s26 }
 0x7df   :  { %v1026_v50 = vpop.permute.xlu0 %1025  ;;  %v1008_v63 = vpop.permute.xlu2 %1007 }
 0x7e0   :  { %v1041_v52 = vadd.f32 %v1026_v50, %v1017_v49  ;;  %v1020_v46 = vadd.f32 %v2246_v38, %v1008_v63 }
 0x7e2   :  { %1055 = vrot.lane.b32.xlu2 %v1041_v52, %s1821_s26 }
 0x7e4   :  { %1073 = vrot.lane.b32.xlu0 %v1041_v52, %s1813_s22 }
 0x7e8   :  { %v1004_v55 = vpop.permute.xlu1 %1003 }
 0x7e9   :  { %v1018_v24 = vadd.f32 %v2231_v30, %v1004_v55 }
 0x7eb   :  { %v2262_v59 = vadd.f32 %v1028_v58, %v1018_v24 }
 0x7ed   :  { %1057 = vrot.lane.b32.xlu1 %v2262_v59, %s1821_s26  ;;  %1075 = vrot.lane.b32.xlu2 %v2262_v59, %s1813_s22 }
 0x7f0   :  { %v1006_v61 = vpop.permute.xlu0 %1005  ;;  %v1030_v57 = vpop.permute.xlu1 %1029 }
 0x7f1   :  { %v1019_v34 = vadd.f32 %v2240_v19, %v1006_v61 }
 0x7f3   :  { %v2269_v28 = vadd.f32 %v1030_v57, %v1019_v34 }
 0x7f5   :  { %1077 = vrot.lane.b32.xlu1 %v2269_v28, %s1813_s22  ;;  %1059 = vrot.lane.b32.xlu0 %v2269_v28, %s1821_s26 }
 0x7f8   :  { %v1032_v47 = vpop.permute.xlu0 %1031 }
 0x7f9   :  { %v2276_v1 = vadd.f32 %v1032_v47, %v1020_v46 }
 0x7fb   :  { %1061 = vrot.lane.b32.xlu2 %v2276_v1, %s1821_s26 }
 0x7fd   :  { %745 = vrot.lane.b32.xlu1 %v2094_v29, %s1816_s1  ;;  %1079 = vrot.lane.b32.xlu0 %v2276_v1, %s1813_s22 }
 0x803   :  { %747 = vrot.lane.b32.xlu2 %v2086_v25, %s1816_s1 }
 0x814   :  { %v1070_v6 = vpop.permute.xlu2 %1069 }
 0x82c   :  { %v1052_v2 = vpop.permute.xlu1 %1051 }
 0x82d   :  { %v1087_v7 = vsel %vm959_vm1, %v1039_v40, %v1052_v2 }
 0x82e   :  { %v1093_v8 = vsel %vm966_vm2, %v1087_v7, %v1070_v6 }
 0x82f   :  { %1718 = vrcp.f32 %v1093_v8  ;;  %v1110_v11 = vand.u32 2147483648, %v1093_v8  ;;  %v1108_v25 = vand.u32 2147483647, %v1093_v8  ;;  %vm1104_vm6 = vweird.f32 %v1093_v8 }
 0x831   :  { %v1111_v54 = vor.u32 1.1754944e-38, %v1110_v11  ;;  %vm1109_vm8 = vcmp.eq.f32.partialorder %v1108_v25, 8.507059e+37 }
 0x835   :  { %v1719_v29 = vpop.eup %1718 }
 0x836   :  { %v1100_v32 = vmul.f32 %v1719_v29, %v1093_v8  ;;  %vm1105_vm5 = vweird.f32 %v1719_v29 }
 0x837   :  { %vm1106_vm7 = vmor %vm1104_vm6, %vm1105_vm5 }
 0x838   :  { %v1101_v9 = vsub.f32 1.0, %v1100_v32 }
 0x83a   :  { %v1102_v12 = vmul.f32 %v1719_v29, %v1101_v9 }
 0x83c   :  { %v1103_v14 = vadd.f32 %v1719_v29, %v1102_v12  ;;  %v1056_v31 = vpop.permute.xlu2 %1055 }
 0x83d   :  { %v1089_v17 = vsel %vm959_vm1, %v1041_v52, %v1056_v31 }
 0x83e   :  { %v1107_v62 = vsel %vm1106_vm7, %v1719_v29, %v1103_v14 }
 0x83f   :  { %v1112_v4 = vsel %vm1109_vm8, %v1111_v54, %v1107_v62 }
 0x840   :  { %v2290_v13 = vmul.f32 %v2201_v51, %v1112_v4 }
 0x842   :  { %1628 = vmatmul.msk.f32.vlgmr.msrb.gmra.mxu2 %vm1191_vm9, %v2290_v13 }
 0x84e   :  { %v1072_v16 = vpop.permute.xlu1 %1071  ;;  %v1054_v21 = vpop.permute.xlu0 %1053 }
 0x84f   :  { %v1088_v22 = vsel %vm959_vm1, %v1040_v44, %v1054_v21  ;;  %v1076_v44 = vpop.permute.xlu2 %1075 }
 0x850   :  { %v1094_v26 = vsel %vm966_vm2, %v1088_v22, %v1072_v16 }
 0x851   :  { %1720 = vrcp.f32 %v1094_v26  ;;  %v1125_v37 = vand.u32 2147483648, %v1094_v26  ;;  %v1123_v20 = vand.u32 2147483647, %v1094_v26  ;;  %vm1119_vm11 = vweird.f32 %v1094_v26 }
 0x853   :  { %v1126_v43 = vor.u32 1.1754944e-38, %v1125_v37  ;;  %vm1124_vm13 = vcmp.eq.f32.partialorder %v1123_v20, 8.507059e+37 }
 0x856   :  { %v1074_v33 = vpop.permute.xlu0 %1073 }
 0x857   :  { %v1721_v35 = vpop.eup %1720  ;;  %v1095_v0 = vsel %vm966_vm2, %v1089_v17, %v1074_v33  ;;  %v1062_v29 = vpop.permute.xlu2 %1061 }
 0x858   :  { %v1115_v36 = vmul.f32 %v1721_v35, %v1094_v26  ;;  %1722 = vrcp.f32 %v1095_v0  ;;  %vm1120_vm10 = vweird.f32 %v1721_v35  ;;  %v1140_v24 = vand.u32 2147483648, %v1095_v0 }
 0x859   :  { %vm1121_vm12 = vmor %vm1119_vm11, %vm1120_vm10  ;;  %v1138_v34 = vand.u32 2147483647, %v1095_v0  ;;  %vm1134_vm5 = vweird.f32 %v1095_v0 }
 0x85a   :  { %v1116_v51 = vsub.f32 1.0, %v1115_v36 }
 0x85b   :  { %vm1139_vm7 = vcmp.eq.f32.partialorder %v1138_v34, 8.507059e+37 }
 0x85c   :  { %v1117_v5 = vmul.f32 %v1721_v35, %v1116_v51 }
 0x85e   :  { %v1723_v39 = vpop.eup %1722  ;;  %v1118_v40 = vadd.f32 %v1721_v35, %v1117_v5 }
 0x85f   :  { %v1130_v41 = vmul.f32 %v1723_v39, %v1095_v0  ;;  %v1058_v42 = vpop.permute.xlu1 %1057  ;;  %vm1135_vm14 = vweird.f32 %v1723_v39 }
 0x860   :  { %v1090_v48 = vsel %vm959_vm1, %v2262_v59, %v1058_v42  ;;  %v1122_v49 = vsel %vm1121_vm12, %v1721_v35, %v1118_v40  ;;  %vm1136_vm6 = vmor %vm1134_vm5, %vm1135_vm14  ;;  %v1141_v59 = vor.u32 1.1754944e-38, %v1140_v24 }
 0x861   :  { %v1131_v50 = vsub.f32 1.0, %v1130_v41  ;;  %v1096_v52 = vsel %vm966_vm2, %v1090_v48, %v1076_v44  ;;  %v1127_v55 = vsel %vm1124_vm13, %v1126_v43, %v1122_v49 }
 0x862   :  { %1724 = vrcp.f32 %v1096_v52  ;;  %v2302_v58 = vmul.f32 %v2213_v10, %v1127_v55  ;;  %v1155_v9 = vand.u32 2147483648, %v1096_v52  ;;  %v1153_v11 = vand.u32 2147483647, %v1096_v52  ;;  %v748_v55 = vpop.permute.xlu2 %747 }
 0x863   :  { %v1132_v61 = vmul.f32 %v1723_v39, %v1131_v50  ;;  %vm1149_vm10 = vweird.f32 %v1096_v52  ;;  %v752_v24 = vsel %vm232_vm3, %v2119_v60, %v748_v55 }
 0x864   :  { %1629 = vmatmul.msk.f32.gmra.mxu2 %vm1191_vm9, %v2302_v58  ;;  %v1156_v62 = vor.u32 1.1754944e-38, %v1155_v9  ;;  %vm1154_vm12 = vcmp.eq.f32.partialorder %v1153_v11, 8.507059e+37 }
 0x865   :  { %v1133_v57 = vadd.f32 %v1723_v39, %v1132_v61 }
 0x867   :  { %v1078_v63 = vpop.permute.xlu1 %1077  ;;  %v1060_v46 = vpop.permute.xlu0 %1059  ;;  %v1137_v47 = vsel %vm1136_vm6, %v1723_v39, %v1133_v57  ;;  %v1312_v57 = vld [vmem:[#allocation5 + $0x138] sm:$0xff] }
 0x868   :  { %v1725_v3 = vpop.eup %1724  ;;  %v1091_v56 = vsel %vm959_vm1, %v2269_v28, %v1060_v46  ;;  %v1142_v10 = vsel %vm1139_vm7, %v1141_v59, %v1137_v47  ;;  %v1092_v28 = vsel %vm959_vm1, %v2276_v1, %v1062_v29  ;;  %v1311_v59 = vld [vmem:[#allocation5 + $0x130] sm:$0xff]  ;;  %1343 = vmatpush.msrb.mxu1 %v1312_v57  ;;  %v1414_v57 = vld [vmem:[#allocation5 + $0x1b8] sm:$0xff] }
 0x869   :  { %v1145_v2 = vmul.f32 %v1725_v3, %v1096_v52  ;;  %v1097_v6 = vsel %vm966_vm2, %v1091_v56, %v1078_v63  ;;  %v2310_v7 = vmul.f32 %v2221_v53, %v1142_v10  ;;  %vm1150_vm8 = vweird.f32 %v1725_v3  ;;  %v1310_v56 = vld [vmem:[#allocation5 + $0x128] sm:$0xff]  ;;  %v1309_v10 = vld [vmem:[#allocation5 + $0x120] sm:$0xff] }
 0x86a   :  { %1726 = vrcp.f32 %v1097_v6  ;;  %vm1151_vm11 = vmor %vm1149_vm10, %vm1150_vm8  ;;  %v1170_v26 = vand.u32 2147483648, %v1097_v6  ;;  %v1168_v1 = vand.u32 2147483647, %v1097_v6  ;;  %1344 = vmatpush.msrb.mxu1 %v1311_v59  ;;  %v1429_v59 = vld [vmem:[#allocation5 + $0x230] sm:$0xf] }
 0x86b   :  { %v1146_v8 = vsub.f32 1.0, %v1145_v2 }
 0x86c   :  { %1630 = vmatmul.msk.f32.gmra.mxu2 %vm1191_vm9, %v2310_v7  ;;  %v1171_v0 = vor.u32 1.1754944e-38, %v1170_v26  ;;  %vm1169_vm5 = vcmp.eq.f32.partialorder %v1168_v1, 8.507059e+37  ;;  %1345 = vmatpush.msrb.mxu1 %v1310_v56 }
 0x86d   :  { %v1147_v32 = vmul.f32 %v1725_v3, %v1146_v8 }
 0x86e   :  { %1346 = vmatpush.msrb.mxu1 %v1309_v10 }
 0x86f   :  { %v1080_v12 = vpop.permute.xlu0 %1079  ;;  %v1148_v25 = vadd.f32 %v1725_v3, %v1147_v32  ;;  %v746_v48 = vpop.permute.xlu1 %745 }
 0x870   :  { %v1727_v14 = vpop.eup %1726  ;;  %v1098_v53 = vsel %vm966_vm2, %v1092_v28, %v1080_v12  ;;  %vm1164_vm2 = vweird.f32 %v1097_v6 }
 0x871   :  { %v1160_v54 = vmul.f32 %v1727_v14, %v1097_v6  ;;  %1728 = vrcp.f32 %v1098_v53  ;;  %v1152_v4 = vsel %vm1151_vm11, %v1725_v3, %v1148_v25  ;;  %vm1165_vm13 = vweird.f32 %v1727_v14 }
 0x872   :  { %v1157_v21 = vsel %vm1154_vm12, %v1156_v62, %v1152_v4  ;;  %vm1166_vm14 = vmor %vm1164_vm2, %vm1165_vm13  ;;  %v1185_v5 = vand.u32 2147483648, %v1098_v53  ;;  %v1183_v39 = vand.u32 2147483647, %v1098_v53  ;;  %vm1179_vm7 = vweird.f32 %v1098_v53 }
 0x873   :  { %v1161_v16 = vsub.f32 1.0, %v1160_v54  ;;  %v2318_v22 = vmul.f32 %v2231_v30, %v1157_v21  ;;  %vm1400_vm11 = vcmask 195584  }
 0x874   :  { %v1186_v41 = vor.u32 1.1754944e-38, %v1185_v5  ;;  %vm1184_vm10 = vcmp.eq.f32.partialorder %v1183_v39, 8.507059e+37 }
 0x875   :  { %v1162_v31 = vmul.f32 %v1727_v14, %v1161_v16  ;;  %1631 = vmatmul.msk.f32.gmra.mxu2 %vm1191_vm9, %v2318_v22 }
 0x877   :  { %v1729_v17 = vpop.eup %1728  ;;  %v1163_v33 = vadd.f32 %v1727_v14, %v1162_v31 }
 0x878   :  { %v1175_v35 = vmul.f32 %v1729_v17, %v1098_v53  ;;  %vm1180_vm6 = vweird.f32 %v1729_v17 }
 0x879   :  { %v1167_v36 = vsel %vm1166_vm14, %v1727_v14, %v1163_v33  ;;  %vm1181_vm8 = vmor %vm1179_vm7, %vm1180_vm6 }
 0x87a   :  { %v1176_v51 = vsub.f32 1.0, %v1175_v35  ;;  %v1172_v37 = vsel %vm1169_vm5, %v1171_v0, %v1167_v36 }
 0x87b   :  { %v1173_v30 = vmul.f32 %v2240_v19, %v1172_v37  ;;  %v751_v19 = vsel %vm232_vm3, %v2110_v45, %v746_v48  ;;  %v1424_v48 = vld [vmem:[#allocation5 + $0x208] sm:$0xff] }
 0x87c   :  { %v1177_v20 = vmul.f32 %v1729_v17, %v1176_v51  ;;  %v753_v49 = vsel %vm58_vm0, %v751_v19, %v2090_v27 }
 0x87d   :  { %1632 = vmatmul.msk.f32.gmra.mxu2 %vm1191_vm9, %v1173_v30 }
 0x87e   :  { %v1178_v40 = vadd.f32 %v1729_v17, %v1177_v20 }
 0x880   :  { %v1182_v42 = vsel %vm1181_vm8, %v1729_v17, %v1178_v40 }
 0x881   :  { %v1187_v43 = vsel %vm1184_vm10, %v1186_v41, %v1182_v42  ;;  %v1428_v42 = vld [vmem:[#allocation5 + $0x228] sm:$0xff] }
 0x882   :  { %v1188_v44 = vmul.f32 %v2246_v38, %v1187_v43  ;;  %v754_v38 = vsel %vm58_vm0, %v752_v24, %v2096_v23  ;;  %v1427_v43 = vld [vmem:[#allocation5 + $0x220] sm:$0xff]  ;;  %1439 = vmatpush.msrb.mxu3 %v1428_v42 }
 0x883   :  { %v1419_v24 = vld [vmem:[#allocation5 + $0x1e0] sm:$0xff] }
 0x884   :  { %1440 = vmatpush.msrb.mxu3 %v1427_v43 }
 0x885   :  { %1633 = vmatmul.msk.f32.gmra.mxu2 %vm1191_vm9, %v1188_v44 }
 0x8c5   :  { %v1231_v50 = vpop.f32.mrf.mxu2 }
 0x8c6   :  { %v1249_v52 = vmul.f32 %v1231_v50, %v753_v49  ;;  %v1421_v50 = vld [vmem:[#allocation5 + $0x1f0] sm:$0xff] }
 0x8c8   :  { %1285 = vrot.lane.b32.xlu1 %v1249_v52, %s1815_s0  ;;  %1261 = vrot.lane.b32.xlu0 %v1249_v52, %s1816_s1 }
 0x8e7   :  { %v1234_v61 = vpop.f32.mrf.mxu2 }
 0x8e8   :  { %v1250_v34 = vmul.f32 %v1234_v61, %v754_v38  ;;  %v1417_v61 = vld [vmem:[#allocation5 + $0x1d0] sm:$0xff] }
 0x8ea   :  { %1287 = vrot.lane.b32.xlu0 %v1250_v34, %s1815_s0  ;;  %1263 = vrot.lane.b32.xlu2 %v1250_v34, %s1816_s1 }
 0x8ef   :  { %v1237_v27 = vpop.f32.mrf.mxu2 }
 0x8f0   :  { %v1251_v45 = vmul.f32 %v1237_v27, %v753_v49 }
 0x8f2   :  { %1289 = vrot.lane.b32.xlu2 %v1251_v45, %s1815_s0  ;;  %1265 = vrot.lane.b32.xlu1 %v1251_v45, %s1816_s1 }
 0x8f8   :  { %v1240_v60 = vpop.f32.mrf.mxu2 }
 0x8f9   :  { %v1252_v63 = vmul.f32 %v1240_v60, %v754_v38  ;;  %v1494_v60 = vld [vmem:[#allocation5 + $0x250] sm:$0xff] }
 0x8fa   :  { %1515 = vmatpush.msra.mxu2 %v1494_v60 }
 0x8fb   :  { %1291 = vrot.lane.b32.xlu1 %v1252_v63, %s1815_s0  ;;  %1267 = vrot.lane.b32.xlu0 %v1252_v63, %s1816_s1 }
 0x900   :  { %v1243_v23 = vpop.f32.mrf.mxu2 }
 0x901   :  { %v1253_v46 = vmul.f32 %v1243_v23, %v753_v49  ;;  %v1422_v49 = vld [vmem:[#allocation5 + $0x1f8] sm:$0xff] }
 0x903   :  { %1293 = vrot.lane.b32.xlu0 %v1253_v46, %s1815_s0  ;;  %1269 = vrot.lane.b32.xlu2 %v1253_v46, %s1816_s1 }
 0x908   :  { %v1246_v47 = vpop.f32.mrf.mxu2 }
 0x909   :  { %v1254_v3 = vmul.f32 %v1246_v47, %v754_v38  ;;  %v1418_v38 = vld [vmem:[#allocation5 + $0x1d8] sm:$0xff] }
 0x90b   :  { %1386 = vrot.lane.b32.xlu0 %v2310_v7, %s1822_s27  ;;  %1295 = vrot.lane.b32.xlu2 %v1254_v3, %s1815_s0 }
 0x90c   :  { %1271 = vrot.lane.b32.xlu1 %v1254_v3, %s1816_s1 }
 0x913   :  { %1394 = vrot.lane.b32.xlu0 %v1188_v44, %s1823_s28  ;;  %1388 = vrot.lane.b32.xlu2 %v2318_v22, %s1822_s27  ;;  %v1425_v44 = vld [vmem:[#allocation5 + $0x210] sm:$0xff] }
 0x914   :  { %1392 = vrot.lane.b32.xlu1 %v1173_v30, %s1823_s28 }
 0x93a   :  { %v1262_v2 = vpop.permute.xlu0 %1261  ;;  %v1286_v8 = vpop.permute.xlu1 %1285 }
 0x93b   :  { %v1279_v6 = vadd.f32 %v1262_v2, %v1249_v52  ;;  %v1420_v52 = vld [vmem:[#allocation5 + $0x1e8] sm:$0xff] }
 0x93d   :  { %v1303_v29 = vadd.f32 %v1286_v8, %v1279_v6 }
 0x93f   :  { %1634 = vmatmul.msk.f32.vlgmr.msrb.gmra.mxu1 %vm232_vm3, %v1303_v29 }
 0x944   :  { %v1264_v7 = vpop.permute.xlu2 %1263 }
 0x945   :  { %v1280_v32 = vadd.f32 %v1264_v7, %v1250_v34  ;;  %v1416_v34 = vld [vmem:[#allocation5 + $0x1c8] sm:$0xff] }
 0x94c   :  { %v1290_v25 = vpop.permute.xlu2 %1289 }
 0x95c   :  { %v1288_v9 = vpop.permute.xlu0 %1287 }
 0x95d   :  { %v1304_v11 = vadd.f32 %v1288_v9, %v1280_v32  ;;  %v1270_v16 = vpop.permute.xlu2 %1269  ;;  %v1491_v9 = vld [vmem:[#allocation5 + $0x238] sm:$0xff] }
 0x95e   :  { %v1283_v22 = vadd.f32 %v1270_v16, %v1253_v46 }
 0x95f   :  { %1635 = vmatmul.msk.f32.gmra.mxu1 %vm232_vm3, %v1304_v11 }
 0x964   :  { %v1266_v28 = vpop.permute.xlu1 %1265 }
 0x965   :  { %v1281_v12 = vadd.f32 %v1266_v28, %v1251_v45  ;;  %v1296_v17 = vpop.permute.xlu2 %1295  ;;  %v1415_v45 = vld [vmem:[#allocation5 + $0x1c0] sm:$0xff]  ;;  %v1535_v28 = vld [vmem:[#allocation5 + $0x270] sm:$0xff] }
 0x966   :  { %1556 = vmatpush.msra.mxu0 %v1535_v28 }
 0x967   :  { %v1305_v14 = vadd.f32 %v1290_v25, %v1281_v12  ;;  %v1534_v12 = vld [vmem:[#allocation5 + $0x268] sm:$0xff]  ;;  %v1533_v25 = vld [vmem:[#allocation5 + $0x260] sm:$0xff] }
 0x968   :  { %1557 = vmatpush.msra.mxu0 %v1534_v12 }
 0x969   :  { %1636 = vmatmul.msk.f32.gmra.mxu1 %vm232_vm3, %v1305_v14 }
 0x96a   :  { %1558 = vmatpush.msra.mxu0 %v1533_v25 }
 0x96d   :  { %v1268_v53 = vpop.permute.xlu0 %1267  ;;  %v1292_v62 = vpop.permute.xlu1 %1291 }
 0x96e   :  { %v1282_v54 = vadd.f32 %v1268_v53, %v1252_v63  ;;  %v1389_v37 = vpop.permute.xlu2 %1388  ;;  %v1493_v63 = vld [vmem:[#allocation5 + $0x248] sm:$0xff]  ;;  %v1677_v53 = vld [vmem:[#allocation5 + $0x2b8] ss:$0 sm:$0xff] }
 0x96f   :  { %v1399_v30 = vsel %vm1191_vm9, %v2302_v58, %v1389_v37  ;;  %v1423_v58 = vld [vmem:[#allocation5 + $0x200] sm:$0xff]  ;;  %1516 = vmatpush.msra.mxu2 %v1493_v63 }
 0x970   :  { %v1306_v4 = vadd.f32 %v1292_v62, %v1282_v54 }
 0x972   :  { %1637 = vmatmul.msk.f32.gmra.mxu1 %vm232_vm3, %v1306_v4 }
 0x975   :  { %v1294_v21 = vpop.permute.xlu0 %1293 }
 0x976   :  { %v1307_v26 = vadd.f32 %v1294_v21, %v1283_v22 }
 0x97a   :  { %1638 = vmatmul.msk.f32.gmra.mxu1 %vm232_vm3, %v1307_v26 }
 0x97d   :  { %v1387_v35 = vpop.permute.xlu0 %1386 }
 0x97e   :  { %v1272_v31 = vpop.permute.xlu1 %1271  ;;  %v1398_v0 = vsel %vm1191_vm9, %v2290_v13, %v1387_v35  ;;  %v1426_v13 = vld [vmem:[#allocation5 + $0x218] sm:$0xff]  ;;  %v1678_v35 = vld [vmem:[#allocation5 + $0x2c0] ss:$0 sm:$0xff] }
 0x97f   :  { %v1284_v1 = vadd.f32 %v1272_v31, %v1254_v3  ;;  %1441 = vmatpush.msrb.mxu3 %v1426_v13  ;;  %v1492_v3 = vld [vmem:[#allocation5 + $0x240] sm:$0xff] }
 0x980   :  { %1517 = vmatpush.msra.mxu2 %v1492_v3 }
 0x981   :  { %v1308_v33 = vadd.f32 %v1296_v17, %v1284_v1  ;;  %1442 = vmatpush.msrb.mxu3 %v1425_v44 }
 0x982   :  { %1518 = vmatpush.msra.mxu2 %v1491_v9 }
 0x983   :  { %1639 = vmatmul.msk.f32.gmra.mxu1 %vm232_vm3, %v1308_v33  ;;  %1443 = vmatpush.msrb.mxu3 %v1424_v48  ;;  %v1532_v33 = vld [vmem:[#allocation5 + $0x258] sm:$0xff] }
 0x984   :  { %1559 = vmatpush.msra.mxu0 %v1532_v33 }
 0x985   :  { %v1395_v5 = vpop.permute.xlu0 %1394  ;;  %1444 = vmatpush.msrb.mxu3 %v1423_v58 }
 0x986   :  { %v1393_v36 = vpop.permute.xlu1 %1392  ;;  %v1402_v20 = vsel %vm1400_vm11, %v1399_v30, %v1395_v5 }
 0x987   :  { %v1401_v51 = vsel %vm1400_vm11, %v1398_v0, %v1393_v36  ;;  %1445 = vmatpush.msrb.mxu3 %v1422_v49 }
 0x988   :  { %1405 = vrot.lane.b32.xlu0 %v1401_v51, %s1816_s1 }
 0x989   :  { %1446 = vmatpush.msrb.mxu3 %v1421_v50 }
 0x98b   :  { %1447 = vmatpush.msrb.mxu3 %v1420_v52 }
 0x98d   :  { %1448 = vmatpush.msrb.mxu3 %v1419_v24 }
 0x98f   :  { %1449 = vmatpush.msrb.mxu3 %v1418_v38 }
 0x990   :  { %1407 = vrot.lane.b32.xlu0 %v1402_v20, %s1816_s1 }
 0x991   :  { %1450 = vmatpush.msrb.mxu3 %v1417_v61 }
 0x993   :  { %1451 = vmatpush.msrb.mxu3 %v1416_v34 }
 0x995   :  { %1452 = vmatpush.msrb.mxu3 %v1415_v45 }
 0x997   :  { %1453 = vmatpush.msrb.mxu3 %v1414_v57 }
 0x9bc   :  { %v1348_v39 = vpop.f32.mrf.mxu1 }
 0x9dc   :  { %v1351_v40 = vpop.f32.mrf.mxu1 }
 0x9e6   :  { %v1354_v41 = vpop.f32.mrf.mxu1 }
 0x9e7   :  { %1368 = vrot.lane.b32.xlu1 %v1354_v41, %s1818_s23 }
 0x9ef   :  { %v1357_v19 = vpop.f32.mrf.mxu1 }
 0x9f0   :  { %1370 = vrot.lane.b32.xlu1 %v1357_v19, %s1818_s23 }
 0x9f7   :  { %v1360_v55 = vpop.f32.mrf.mxu1 }
 0x9f8   :  { %1569 = vrot.lane.b32.xlu1 %v1896_v15, %s1818_s23  ;;  %1376 = vrot.lane.b32.xlu2 %v1360_v55, %s1815_s0  ;;  %v1413_v15 = vld [vmem:[#allocation5 + $0x1b0] sm:$0xff] }
 0x9f9   :  { %1454 = vmatpush.msrb.mxu3 %v1413_v15 }
 0x9fa   :  { %v1406_v56 = vpop.permute.xlu0 %1405 }
 0x9fb   :  { %1640 = vmatpush.msk.msra.mxu3 %vm1210_vm4, %v1429_v59 }
 0xa00   :  { %v1363_v27 = vpop.f32.mrf.mxu1 }
 0xa01   :  { %1378 = vrot.lane.b32.xlu2 %v1363_v27, %s1815_s0 }
 0xa02   :  { %v1408_v29 = vpop.permute.xlu0 %1407 }
 0xa09   :  { %1571 = vrot.lane.b32.xlu2 %v1901_v18, %s1818_s23 }
 0xa52   :  { %v1377_v46 = vpop.permute.xlu2 %1376 }
 0xa59   :  { %v1369_v23 = vpop.permute.xlu1 %1368 }
 0xa5a   :  { %v1382_v47 = vsel %vm232_vm3, %v1348_v39, %v1369_v23 }
 0xa5b   :  { %v1384_v18 = vsel %vm58_vm0, %v1382_v47, %v1377_v46  ;;  %v1379_v6 = vpop.permute.xlu2 %1378 }
 0xa5c   :  { %v1411_v10 = vsel %vm809_vm15, %v1384_v18, %v1406_v56 }
 0xa5d   :  { %1455 = vmatmul.f32.vlgmr.msrb.gmra.mxu3 %v1411_v10 }
 0xa5e   :  { %1647 = vmatpush.msrb.mxu3 %v1535_v28 }
 0xa60   :  { %1648 = vmatpush.msrb.mxu3 %v1534_v12 }
 0xa62   :  { %v1371_v2 = vpop.permute.xlu1 %1370  ;;  %1649 = vmatpush.msrb.mxu3 %v1533_v25 }
 0xa63   :  { %v1383_v8 = vsel %vm232_vm3, %v1351_v40, %v1371_v2  ;;  %v1679_v40 = vld [vmem:[#allocation5 + $0x2c8] ss:$0 sm:$0xff]  ;;  %v1572_v50 = vpop.permute.xlu2 %1571 }
 0xa64   :  { %v1385_v7 = vsel %vm58_vm0, %v1383_v8, %v1379_v6  ;;  %1650 = vmatpush.msrb.mxu3 %v1532_v33 }
 0xa65   :  { %v1412_v32 = vsel %vm809_vm15, %v1385_v7, %v1408_v29 }
 0xa66   :  { %1458 = vmatmul.f32.gmra.mxu3 %v1412_v32 }
 0xa6a   :  { %v1570_v44 = vpop.permute.xlu1 %1569 }
 0xa6e   :  { %1641 = vmatmul.msk.f32.vlgmr.msra.gmra.mxu3 %vm959_vm1, %v1406_v56 }
 0xa76   :  { %1642 = vmatmul.msk.f32.gmra.mxu3 %vm959_vm1, %v1408_v29 }
 0xae0   :  { %v1456_v11 = vpop.f32.mrf.mxu3 }
 0xae1   :  { %v1457_v54 = vadd.f32 %v1677_v53, %v1456_v11 }
 0xae9   :  { %v1459_v14 = vpop.f32.mrf.mxu3 }
 0xaea   :  { %v1460_v22 = vadd.f32 %v1677_v53, %v1459_v14 }
 0xaf1   :  { %v1479_v62 = vpop.f32.mrf.mxu3 }
 0xaf2   :  { %v1480_v4 = vadd.f32 %v1479_v62, %v1457_v54 }
 0xaf4   :  { %v1487_v16 = vmul.f32 0.01, %v1480_v4  ;;  %vm1485_vm4 = vcmp.gt.f32.partialorder %v1480_v4, 0.0  ;;  %v1583_v48 = vsel %vm232_vm3, %v1480_v4, %v1570_v44 }
 0xaf6   :  { %v1489_v21 = vsel %vm1485_vm4, %v1480_v4, %v1487_v16 }
 0xaf7   :  { %1643 = vmatmul.msk.f32.vlgmr.msra.gmra.mxu2 %vm232_vm3, %v1489_v21 }
 0xaf9   :  { %v1482_v26 = vpop.f32.mrf.mxu3 }
 0xafa   :  { %v1483_v31 = vadd.f32 %v1482_v26, %v1460_v22 }
 0xafc   :  { %vm1486_vm1 = vcmp.gt.f32.partialorder %v1483_v31, 0.0  ;;  %v1488_v1 = vmul.f32 0.01, %v1483_v31  ;;  %v1584_v52 = vsel %vm232_vm3, %v1483_v31, %v1572_v50 }
 0xafe   :  { %v1490_v17 = vsel %vm1486_vm1, %v1483_v31, %v1488_v1 }
 0xaff   :  { %1644 = vmatmul.msk.f32.gmra.mxu2 %vm232_vm3, %v1490_v17 }
 0xb7a   :  { %v1520_v0 = vpop.f32.mrf.mxu2 }
 0xb7b   :  { %v1521_v36 = vadd.f32 %v1678_v35, %v1520_v0 }
 0xb7d   :  { %vm1526_vm9 = vcmp.gt.f32.partialorder %v1521_v36, 0.0  ;;  %v1528_v51 = vmul.f32 0.01, %v1521_v36 }
 0xb7f   :  { %v1530_v37 = vsel %vm1526_vm9, %v1521_v36, %v1528_v51 }
 0xb80   :  { %1645 = vmatmul.msk.f32.vlgmr.msra.gmra.mxu0 %vm232_vm3, %v1530_v37 }
 0xb82   :  { %v1523_v5 = vpop.f32.mrf.mxu2 }
 0xb83   :  { %v1524_v30 = vadd.f32 %v1678_v35, %v1523_v5 }
 0xb85   :  { %vm1527_vm12 = vcmp.gt.f32.partialorder %v1524_v30, 0.0  ;;  %v1529_v20 = vmul.f32 0.01, %v1524_v30 }
 0xb87   :  { %v1531_v39 = vsel %vm1527_vm12, %v1524_v30, %v1529_v20 }
 0xb88   :  { %1646 = vmatmul.msk.f32.vlgmr.msrb.gmra.mxu3 %vm232_vm3, %v1531_v39 }
 0xbfd   :  { %v1561_v41 = vpop.f32.mrf.mxu0 }
 0xbfe   :  { %v1562_v42 = vadd.f32 %v1679_v40, %v1561_v41 }
 0xc00   :  { %1577 = vrot.lane.b32.xlu0 %v1562_v42, %s1815_s0 }
 0xc0b   :  { %v1564_v43 = vpop.f32.mrf.mxu3 }
 0xc0c   :  { %v1565_v13 = vadd.f32 %v1679_v40, %v1564_v43 }
 0xc0e   :  { %1579 = vrot.lane.b32.xlu1 %v1565_v13, %s1815_s0 }
 0xc72   :  { %v1578_v19 = vpop.permute.xlu0 %1577 }
 0xc73   :  { %v1585_v58 = vsel %vm58_vm0, %v1583_v48, %v1578_v19 }
 0xc74   :  { %v1587_v49 = vsel %vm809_vm15, %v1585_v58, 0.0 }
 0xc75   :  { %1589 = vst [vmem:[#allocation7] sm:$0xff] %v1587_v49 }
 0xc80   :  { %v1580_v55 = vpop.permute.xlu1 %1579 }
 0xc81   :  { %v1586_v24 = vsel %vm58_vm0, %v1584_v52, %v1580_v55 }
 0xc82   :  { %v1588_v38 = vsel %vm809_vm15, %v1586_v24, 0.0 }
 0xc83   :  { %1590 = vst [vmem:[#allocation7 + $0x8] sm:$0xff] %v1588_v38 }
 0xc84   :  { %1603 = dma.vmem_to_hbm [thread:$0]  %s1596_s30, 256, %s1598_s5, [#allocation4], %s1812_s21, %s1812_s21, %s1813_s22  }
 0xc85   :  { %1806 = dma.done.wait [#allocation4], 256  }
 0xc86   :  { %1807 = vsyncadd [#allocation4], 4294967040 }
 0xc87   :  { %1608 = vsyncpa [#allocation3], 1 }
 0xc88   :  { %1609 = vsyncpa [#allocation6], 1 }
 0xc89   :  { %1610 = vsyncpa [#allocation4], 1 }

</bundles_post_ra>
